<compile_context>
chip_gen: v5e
topology: v5e:2x2
jax: 0.10.0
libtpu: 0.0.40
codegen_flags: <defaults>
</compile_context>

<pallas_src>
import functools

import jax
import jax.numpy as jnp
from jax.experimental import pallas as pl
from jax.experimental.pallas import tpu as pltpu


# ----------------------------- slab layout -----------------------------------
_LANES = 128


def _align8(n):
    return (n + 7) // 8 * 8


def _slab_layout(T, F, He, Hd, E, O):
    """Static (row_offset, n_rows, n_cols) per packed section; 8-aligned rows."""
    layout = {}
    r = 0

    def add(name, rows, cols):
        nonlocal r
        layout[name] = (r, rows, cols)
        r += _align8(rows)

    add("enc_wbd", T * F, T * 4 * He)   # kron(I_T, enc W_ih^T)  (32, 128)
    add("enc_b",   1,     T * 4 * He)   # merged enc bias tiled   (1, 128)
    add("enc_whh", He,    4 * He)       # enc W_hh^T              (4, 16)
    add("dec_wih", E,     4 * Hd)       # dec W_ih^T              (4, 32)
    add("dec_whh", Hd,    4 * Hd)       # dec W_hh^T              (8, 32)
    add("dec_b",   1,     4 * Hd)       # merged dec bias         (1, 32)
    add("fc_wbd",  T * Hd, T * O)       # kron(I_T, fc_w^T)       (64, 32)
    add("fc_b",    1,     T * O)        # fc bias tiled           (1, 32)
    return layout, _align8(r)


# ----------------------------- kernel helpers ---------------------------------
def _tree_sum(terms):
    """Pairwise (log-depth) sum of a list of same-shaped arrays."""
    while len(terms) > 1:
        nxt = [terms[i] + terms[i + 1] for i in range(0, len(terms) - 1, 2)]
        if len(terms) % 2 == 1:
            nxt.append(terms[-1])
        terms = nxt
    return terms[0]


def _lstm_recurrence(gx_fn, whh_rows, n_steps, batch, hidden, collect_h):
    """Zero-init LSTM recurrence; gate columns laid out (i|f|o|g) with the
    i/f/o columns (weights + bias) pre-scaled by 0.5 so a single tanh over all
    4H lanes yields sigmoid(z) = 0.5*tanh(z/2)+0.5 on the VPU.

    gx_fn(t) returns the precomputed input projection (+ merged bias) for step
    t, shape (batch, 4*hidden); it must not depend on h/c.  The h @ W_hh^T term
    is a tree-summed VPU broadcast-MAC (no per-step MXU round-trip, log-depth
    add chain)."""
    f32 = jnp.float32
    H = hidden
    h = jnp.zeros((batch, H), f32)
    c = jnp.zeros((batch, H), f32)
    hs = []
    for t in range(n_steps):                 # static trip count -> fully unrolled
        rec = _tree_sum([h[:, k:k + 1] * whh_rows[k] for k in range(H)])
        gates = gx_fn(t) + rec
        t_all = jnp.tanh(gates)              # ONE EUP push for all 4 gates
        sig = 0.5 * t_all[:, :3 * H] + 0.5   # sigmoid for i,f,o recovered on VPU
        i_g = sig[:, :H]
        f_g = sig[:, H:2 * H]
        o_g = sig[:, 2 * H:3 * H]
        g_g = t_all[:, 3 * H:]
        c = f_g * c + i_g * g_g
        h = o_g * jnp.tanh(c)                # second (and last) EUP push
        if collect_h:
            hs.append(h)
    return h, hs


def lstm_ae_kernel(x_ref, slab_ref, out_ref, dech_ref, *,
                   seq_len, no_features, embedding_dim):
    """Fused Encoder-LSTM + Decoder-LSTM + per-step Linear.

    x_ref    : (B, T*F)    input, row-major (lane = t*F + f)
    slab_ref : (144, 128)  packed parameters (see _slab_layout)
    out_ref  : (B, T*O)    decoded output (lane-dense; reshaped outside)
    dech_ref : (B, Hd)     decoder final hidden state
    """
    f32 = jnp.float32
    T, F = seq_len, no_features
    He, E = embedding_dim, embedding_dim
    Hd, O = 2 * embedding_dim, no_features
    B = x_ref.shape[0]

    layout, _ = _slab_layout(T, F, He, Hd, E, O)

    def sl(name):
        r0, nr, nc = layout[name]
        return slab_ref[r0:r0 + nr, 0:nc]    # static slice of the single slab

    # Load parameter sections once (hoisted; they live in vregs across the loops).
    enc_wbd = sl("enc_wbd")                  # (T*F, T*4He)
    enc_b = sl("enc_b")                      # (1, T*4He)
    ewhh = sl("enc_whh")                     # (He, 4He)
    dwih = sl("dec_wih")                     # (E, 4Hd)
    dwhh = sl("dec_whh")                     # (Hd, 4Hd)
    dec_b = sl("dec_b")                      # (1, 4Hd)
    fc_wbd = sl("fc_wbd")                    # (T*Hd, T*O)
    fc_b = sl("fc_b")                        # (1, T*O)

    ewhh_rows = [ewhh[k:k + 1, :] for k in range(He)]
    dwhh_rows = [dwhh[k:k + 1, :] for k in range(Hd)]
    dwih_rows = [dwih[k:k + 1, :] for k in range(E)]

    # ---- Encoder -------------------------------------------------------------
    # All T input projections in a single MXU matmul against the block-diagonal
    # kron(I_T, W_ih^T); each step's gx is a contiguous lane slice of one
    # (B, 128) vreg row, off the recurrence chain.
    gx_all = (jnp.dot(x_ref[...], enc_wbd, preferred_element_type=f32)
              + enc_b)                                          # (B, T*4He)
    enc_h, _ = _lstm_recurrence(
        lambda t: gx_all[:, t * 4 * He:(t + 1) * 4 * He],
        ewhh_rows, T, B, He, collect_h=False)

    # ---- Decoder -------------------------------------------------------------
    # Input is the encoded vector repeated every step (x.unsqueeze(1).repeat),
    # so its projection is computed once.  Done as a 4-row VPU broadcast-MAC
    # (tree-summed) -> no MXU push/pop on the encoder->decoder serial chain.
    gxd = _tree_sum([enc_h[:, k:k + 1] * dwih_rows[k] for k in range(E)]) + dec_b
    dec_h, hs = _lstm_recurrence(lambda t: gxd, dwhh_rows, T, B, Hd,
                                 collect_h=True)

    # ---- fc hoisted out of the recurrence ------------------------------------
    # Stack per-step hidden states along lanes, apply the whole fc as one MXU
    # matmul against the block-diagonal weight, write one lane-dense slab.
    hs_cat = jnp.concatenate(hs, axis=1)                        # (B, T*Hd)
    out = (jnp.dot(hs_cat, fc_wbd, preferred_element_type=f32)
           + fc_b)                                              # (B, T*O)
    out_ref[...] = out.astype(out_ref.dtype)
    dech_ref[...] = dec_h.astype(dech_ref.dtype)


# ----------------------------- parameter prep ---------------------------------
def _reorder_and_scale_gates(w, hidden):
    """Last axis 4H: permute PyTorch (i,f,g,o) -> (i,f,o,g) AND scale the i/f/o
    columns by 0.5 so sigmoid(z) can be recovered from tanh(z/2) in-kernel."""
    i = w[..., 0:hidden]
    f = w[..., hidden:2 * hidden]
    g = w[..., 2 * hidden:3 * hidden]
    o = w[..., 3 * hidden:4 * hidden]
    return jnp.concatenate([0.5 * i, 0.5 * f, 0.5 * o, g], axis=-1)


def init_lstm_ae_params(key, no_features, embedding_dim):
    """Deterministic synthetic parameters in PyTorch layout (nn.LSTM / nn.Linear)."""
    F, E = no_features, embedding_dim
    He, Hd, O = E, 2 * E, no_features
    ks = jax.random.split(key, 10)

    def u(k, shape, s):
        return jax.random.uniform(k, shape, jnp.float32, -s, s)

    se, sd = 1.0 / (He ** 0.5), 1.0 / (Hd ** 0.5)
    return {
        "enc_w_ih": u(ks[0], (4 * He, F), se), "enc_w_hh": u(ks[1], (4 * He, He), se),
        "enc_b_ih": u(ks[2], (4 * He,), se),   "enc_b_hh": u(ks[3], (4 * He,), se),
        "dec_w_ih": u(ks[4], (4 * Hd, E), sd), "dec_w_hh": u(ks[5], (4 * Hd, Hd), sd),
        "dec_b_ih": u(ks[6], (4 * Hd,), sd),   "dec_b_hh": u(ks[7], (4 * Hd,), sd),
        "fc_w": u(ks[8], (O, Hd), sd),         "fc_b": u(ks[9], (O,), sd),
    }


def prepare_params(params, seq_len):
    """One-time preprocessing (NOT per forward call): transposes, gate reorder
    (i,f,g,o)->(i,f,o,g) with 0.5 pre-scale on i/f/o columns+bias, bias merge,
    block-diagonal kron weights for the hoisted input/fc matmuls, and packing of
    everything into a single (rows, 128) f32 slab -> one HBM->VMEM DMA."""
    T = seq_len
    He = params["enc_w_hh"].shape[1]
    Hd = params["dec_w_hh"].shape[1]
    F = params["enc_w_ih"].shape[1]
    E = params["dec_w_ih"].shape[1]
    O = params["fc_w"].shape[0]

    enc_wih = _reorder_and_scale_gates(params["enc_w_ih"].T, He)        # (F, 4He)
    enc_whh = _reorder_and_scale_gates(params["enc_w_hh"].T, He)        # (He, 4He)
    enc_b = _reorder_and_scale_gates(
        (params["enc_b_ih"] + params["enc_b_hh"]).reshape(1, -1), He)   # (1, 4He)
    dec_wih = _reorder_and_scale_gates(params["dec_w_ih"].T, Hd)        # (E, 4Hd)
    dec_whh = _reorder_and_scale_gates(params["dec_w_hh"].T, Hd)        # (Hd, 4Hd)
    dec_b = _reorder_and_scale_gates(
        (params["dec_b_ih"] + params["dec_b_hh"]).reshape(1, -1), Hd)   # (1, 4Hd)
    fcw_t = params["fc_w"].T                                            # (Hd, O)

    eye_t = jnp.eye(T, dtype=jnp.float32)
    sections = {
        "enc_wbd": jnp.kron(eye_t, enc_wih),                            # (T*F, T*4He)
        "enc_b":   jnp.tile(enc_b, (1, T)),                             # (1, T*4He)
        "enc_whh": enc_whh,
        "dec_wih": dec_wih,
        "dec_whh": dec_whh,
        "dec_b":   dec_b,
        "fc_wbd":  jnp.kron(eye_t, fcw_t),                              # (T*Hd, T*O)
        "fc_b":    jnp.tile(params["fc_b"].reshape(1, -1), (1, T)),     # (1, T*O)
    }
    layout, total_rows = _slab_layout(T, F, He, Hd, E, O)
    slab = jnp.zeros((total_rows, _LANES), jnp.float32)
    for name, (r0, nr, nc) in layout.items():
        assert nc <= _LANES, f"section {name} wider than {_LANES} lanes"
        slab = slab.at[r0:r0 + nr, 0:nc].set(sections[name])
    return slab


# ----------------------------- forward wrapper --------------------------------
@functools.partial(jax.jit, static_argnames=("seq_len", "no_features",
                                             "embedding_dim"))
def lstm_ae_forward(x, slab, *, seq_len, no_features, embedding_dim):
    """x: (B, seq_len, no_features). Returns (decoded (B, seq_len, no_features),
    hidden_state (1, B, 2*embedding_dim)).  LSTM_AE(classification=False).forward
    returns `decoded`; the decoder hidden state is also exposed here."""
    B, T, F = x.shape
    Hd, O = 2 * embedding_dim, no_features

    # Free row-major collapse (no transpose, no extra XLA copy kernel).
    x_flat = x.reshape(B, T * F)

    vmem = pl.BlockSpec(memory_space=pltpu.MemorySpace.VMEM)
    kernel = functools.partial(lstm_ae_kernel, seq_len=T,
                               no_features=no_features,
                               embedding_dim=embedding_dim)

    out_flat, dec_h = pl.pallas_call(
        kernel,
        out_shape=(jax.ShapeDtypeStruct((B, T * O), jnp.float32),
                   jax.ShapeDtypeStruct((B, Hd), jnp.float32)),
        in_specs=[vmem, vmem],        # exactly 2 input DMAs: x + packed slab
        out_specs=(vmem, vmem),
    )(x_flat, slab)

    decoded = out_flat.reshape(B, T, O)        # free: (B, T*O) -> (B, T, O)
    hidden_state = dec_h[None, :, :]           # (1, B, Hd)
    return decoded, hidden_state


# ----------------------- pure-JAX reference (PyTorch semantics) ----------------
def _lstm_ref(x_seq, w_ih, w_hh, b_ih, b_hh):
    """Single-layer batch_first nn.LSTM with zero init, torch gate order."""
    B, T, _ = x_seq.shape
    H = w_hh.shape[1]
    h = jnp.zeros((B, H), jnp.float32)
    c = jnp.zeros((B, H), jnp.float32)
    outs = []
    for t in range(T):
        g = x_seq[:, t, :] @ w_ih.T + h @ w_hh.T + b_ih + b_hh
        i = jax.nn.sigmoid(g[:, 0:H])
        f = jax.nn.sigmoid(g[:, H:2 * H])
        gg = jnp.tanh(g[:, 2 * H:3 * H])
        o = jax.nn.sigmoid(g[:, 3 * H:4 * H])
        c = f * c + i * gg
        h = o * jnp.tanh(c)
        outs.append(h)
    return jnp.stack(outs, axis=1), h


def lstm_ae_ref(x, params, seq_len):
    _, enc_h = _lstm_ref(x, params["enc_w_ih"], params["enc_w_hh"],
                         params["enc_b_ih"], params["enc_b_hh"])
    dec_in = jnp.repeat(enc_h[:, None, :], seq_len, axis=1)
    dec_seq, dec_h = _lstm_ref(dec_in, params["dec_w_ih"], params["dec_w_hh"],
                               params["dec_b_ih"], params["dec_b_hh"])
    decoded = dec_seq @ params["fc_w"].T + params["fc_b"]
    return decoded, dec_h[None, :, :]


if __name__ == "__main__":
    # LSTM_AE(seq_len=8, no_features=4, embedding_dim=4): encoder hidden = 4,
    # decoder hidden = 8, decoder output = no_features = 4. Input x: (B, T, F).
    # NOTE: the fc2 classification head is only used when classification=True
    # (default False), so it is intentionally not part of this kernel.
    seq_len, no_features, embedding_dim = 8, 4, 4
    batch = 2

    key = jax.random.PRNGKey(0)
    k_params, k_x = jax.random.split(key)
    params = init_lstm_ae_params(k_params, no_features, embedding_dim)
    slab = prepare_params(params, seq_len)          # one-time, off the hot path
    x = jax.random.normal(k_x, (batch, seq_len, no_features), dtype=jnp.float32)

    decoded, hidden_state = lstm_ae_forward(
        x, slab, seq_len=seq_len, no_features=no_features,
        embedding_dim=embedding_dim)
    jax.block_until_ready(decoded)
    jax.block_until_ready(hidden_state)

    assert decoded.shape == (batch, seq_len, no_features)
    assert hidden_state.shape == (1, batch, 2 * embedding_dim)

    ref_decoded, ref_hidden = lstm_ae_ref(x, params, seq_len)
    assert jnp.allclose(decoded, ref_decoded, rtol=1e-3, atol=1e-3), (
        float(jnp.max(jnp.abs(decoded - ref_decoded))))
    assert jnp.allclose(hidden_state, ref_hidden, rtol=1e-3, atol=1e-3), (
        float(jnp.max(jnp.abs(hidden_state - ref_hidden))))
    print("KERNEL_OK")
</pallas_src>

<mosaic_0001>
module attributes {stable_mosaic.version = 11 : i64} {
  func.func @lstm_ae_kernel(%arg0: memref<2x32xf32, #tpu.memory_space<vmem>>, %arg1: memref<144x128xf32, #tpu.memory_space<vmem>>, %arg2: memref<2x32xf32, #tpu.memory_space<vmem>>, %arg3: memref<2x8xf32, #tpu.memory_space<vmem>>) attributes {dimension_semantics = [], scalar_prefetch = 0 : i64, scratch_operands = 0 : i64, tpu.core_type = #tpu.core_type<tc>} {
    %c0 = arith.constant 0 : index
    %c0_0 = arith.constant 0 : index
    %0 = vector.load %arg1[%c0, %c0_0] : memref<144x128xf32, #tpu.memory_space<vmem>>, vector<32x128xf32>
    %c32 = arith.constant 32 : index
    %c0_1 = arith.constant 0 : index
    %1 = vector.load %arg1[%c32, %c0_1] : memref<144x128xf32, #tpu.memory_space<vmem>>, vector<1x128xf32>
    %c40 = arith.constant 40 : index
    %c0_2 = arith.constant 0 : index
    %2 = vector.load %arg1[%c40, %c0_2] : memref<144x128xf32, #tpu.memory_space<vmem>>, vector<4x16xf32>
    %c48 = arith.constant 48 : index
    %c0_3 = arith.constant 0 : index
    %3 = vector.load %arg1[%c48, %c0_3] : memref<144x128xf32, #tpu.memory_space<vmem>>, vector<4x32xf32>
    %c56 = arith.constant 56 : index
    %c0_4 = arith.constant 0 : index
    %4 = vector.load %arg1[%c56, %c0_4] : memref<144x128xf32, #tpu.memory_space<vmem>>, vector<8x32xf32>
    %c64 = arith.constant 64 : index
    %c0_5 = arith.constant 0 : index
    %5 = vector.load %arg1[%c64, %c0_5] : memref<144x128xf32, #tpu.memory_space<vmem>>, vector<1x32xf32>
    %c72 = arith.constant 72 : index
    %c0_6 = arith.constant 0 : index
    %6 = vector.load %arg1[%c72, %c0_6] : memref<144x128xf32, #tpu.memory_space<vmem>>, vector<64x32xf32>
    %c136 = arith.constant 136 : index
    %c0_7 = arith.constant 0 : index
    %7 = vector.load %arg1[%c136, %c0_7] : memref<144x128xf32, #tpu.memory_space<vmem>>, vector<1x32xf32>
    %8 = vector.extract_strided_slice %2 {offsets = [0, 0], sizes = [1, 16], strides = [1, 1]} : vector<4x16xf32> to vector<1x16xf32>
    %9 = vector.extract_strided_slice %2 {offsets = [1, 0], sizes = [1, 16], strides = [1, 1]} : vector<4x16xf32> to vector<1x16xf32>
    %10 = vector.extract_strided_slice %2 {offsets = [2, 0], sizes = [1, 16], strides = [1, 1]} : vector<4x16xf32> to vector<1x16xf32>
    %11 = vector.extract_strided_slice %2 {offsets = [3, 0], sizes = [1, 16], strides = [1, 1]} : vector<4x16xf32> to vector<1x16xf32>
    %12 = vector.extract_strided_slice %4 {offsets = [0, 0], sizes = [1, 32], strides = [1, 1]} : vector<8x32xf32> to vector<1x32xf32>
    %13 = vector.extract_strided_slice %4 {offsets = [1, 0], sizes = [1, 32], strides = [1, 1]} : vector<8x32xf32> to vector<1x32xf32>
    %14 = vector.extract_strided_slice %4 {offsets = [2, 0], sizes = [1, 32], strides = [1, 1]} : vector<8x32xf32> to vector<1x32xf32>
    %15 = vector.extract_strided_slice %4 {offsets = [3, 0], sizes = [1, 32], strides = [1, 1]} : vector<8x32xf32> to vector<1x32xf32>
    %16 = vector.extract_strided_slice %4 {offsets = [4, 0], sizes = [1, 32], strides = [1, 1]} : vector<8x32xf32> to vector<1x32xf32>
    %17 = vector.extract_strided_slice %4 {offsets = [5, 0], sizes = [1, 32], strides = [1, 1]} : vector<8x32xf32> to vector<1x32xf32>
    %18 = vector.extract_strided_slice %4 {offsets = [6, 0], sizes = [1, 32], strides = [1, 1]} : vector<8x32xf32> to vector<1x32xf32>
    %19 = vector.extract_strided_slice %4 {offsets = [7, 0], sizes = [1, 32], strides = [1, 1]} : vector<8x32xf32> to vector<1x32xf32>
    %20 = vector.extract_strided_slice %3 {offsets = [0, 0], sizes = [1, 32], strides = [1, 1]} : vector<4x32xf32> to vector<1x32xf32>
    %21 = vector.extract_strided_slice %3 {offsets = [1, 0], sizes = [1, 32], strides = [1, 1]} : vector<4x32xf32> to vector<1x32xf32>
    %22 = vector.extract_strided_slice %3 {offsets = [2, 0], sizes = [1, 32], strides = [1, 1]} : vector<4x32xf32> to vector<1x32xf32>
    %23 = vector.extract_strided_slice %3 {offsets = [3, 0], sizes = [1, 32], strides = [1, 1]} : vector<4x32xf32> to vector<1x32xf32>
    %c0_8 = arith.constant 0 : index
    %c0_9 = arith.constant 0 : index
    %24 = vector.load %arg0[%c0_8, %c0_9] : memref<2x32xf32, #tpu.memory_space<vmem>>, vector<2x32xf32>
    %cst = arith.constant dense<0.000000e+00> : vector<2x128xf32>
    %25 = tpu.matmul %24, %0, %cst {dimension_numbers = #tpu.dot_dimension_numbers<[1], [0], [0], [1], [0, 0, 1, 1], [], []>} : vector<2x32xf32>, vector<32x128xf32>, vector<2x128xf32> -> vector<2x128xf32>
    %26 = vector.broadcast %1 : vector<1x128xf32> to vector<2x128xf32>
    %27 = arith.addf %25, %26 : vector<2x128xf32>
    %cst_10 = arith.constant 0.000000e+00 : f32
    %28 = vector.broadcast %cst_10 : f32 to vector<2x4xf32>
    %cst_11 = arith.constant 0.000000e+00 : f32
    %29 = vector.broadcast %cst_11 : f32 to vector<2x4xf32>
    %30 = vector.extract_strided_slice %28 {offsets = [0, 0], sizes = [2, 1], strides = [1, 1]} : vector<2x4xf32> to vector<2x1xf32>
    %31 = vector.broadcast %30 : vector<2x1xf32> to vector<2x16xf32>
    %32 = vector.broadcast %8 : vector<1x16xf32> to vector<2x16xf32>
    %33 = arith.mulf %31, %32 : vector<2x16xf32>
    %34 = vector.extract_strided_slice %28 {offsets = [0, 1], sizes = [2, 1], strides = [1, 1]} : vector<2x4xf32> to vector<2x1xf32>
    %35 = vector.broadcast %34 : vector<2x1xf32> to vector<2x16xf32>
    %36 = vector.broadcast %9 : vector<1x16xf32> to vector<2x16xf32>
    %37 = arith.mulf %35, %36 : vector<2x16xf32>
    %38 = vector.extract_strided_slice %28 {offsets = [0, 2], sizes = [2, 1], strides = [1, 1]} : vector<2x4xf32> to vector<2x1xf32>
    %39 = vector.broadcast %38 : vector<2x1xf32> to vector<2x16xf32>
    %40 = vector.broadcast %10 : vector<1x16xf32> to vector<2x16xf32>
    %41 = arith.mulf %39, %40 : vector<2x16xf32>
    %42 = vector.extract_strided_slice %28 {offsets = [0, 3], sizes = [2, 1], strides = [1, 1]} : vector<2x4xf32> to vector<2x1xf32>
    %43 = vector.broadcast %42 : vector<2x1xf32> to vector<2x16xf32>
    %44 = vector.broadcast %11 : vector<1x16xf32> to vector<2x16xf32>
    %45 = arith.mulf %43, %44 : vector<2x16xf32>
    %46 = arith.addf %33, %37 : vector<2x16xf32>
    %47 = arith.addf %41, %45 : vector<2x16xf32>
    %48 = arith.addf %46, %47 : vector<2x16xf32>
    %49 = vector.extract_strided_slice %27 {offsets = [0, 0], sizes = [2, 16], strides = [1, 1]} : vector<2x128xf32> to vector<2x16xf32>
    %50 = arith.addf %49, %48 : vector<2x16xf32>
    %51 = math.tanh %50 : vector<2x16xf32>
    %52 = vector.extract_strided_slice %51 {offsets = [0, 0], sizes = [2, 12], strides = [1, 1]} : vector<2x16xf32> to vector<2x12xf32>
    %cst_12 = arith.constant 5.000000e-01 : f32
    %53 = vector.broadcast %cst_12 : f32 to vector<2x12xf32>
    %54 = arith.mulf %53, %52 : vector<2x12xf32>
    %cst_13 = arith.constant 5.000000e-01 : f32
    %55 = vector.broadcast %cst_13 : f32 to vector<2x12xf32>
    %56 = arith.addf %54, %55 : vector<2x12xf32>
    %57 = vector.extract_strided_slice %56 {offsets = [0, 0], sizes = [2, 4], strides = [1, 1]} : vector<2x12xf32> to vector<2x4xf32>
    %58 = vector.extract_strided_slice %56 {offsets = [0, 4], sizes = [2, 4], strides = [1, 1]} : vector<2x12xf32> to vector<2x4xf32>
    %59 = vector.extract_strided_slice %56 {offsets = [0, 8], sizes = [2, 4], strides = [1, 1]} : vector<2x12xf32> to vector<2x4xf32>
    %60 = vector.extract_strided_slice %51 {offsets = [0, 12], sizes = [2, 4], strides = [1, 1]} : vector<2x16xf32> to vector<2x4xf32>
    %61 = arith.mulf %58, %29 : vector<2x4xf32>
    %62 = arith.mulf %57, %60 : vector<2x4xf32>
    %63 = arith.addf %61, %62 : vector<2x4xf32>
    %64 = math.tanh %63 : vector<2x4xf32>
    %65 = arith.mulf %59, %64 : vector<2x4xf32>
    %66 = vector.extract_strided_slice %65 {offsets = [0, 0], sizes = [2, 1], strides = [1, 1]} : vector<2x4xf32> to vector<2x1xf32>
    %67 = vector.broadcast %66 : vector<2x1xf32> to vector<2x16xf32>
    %68 = vector.broadcast %8 : vector<1x16xf32> to vector<2x16xf32>
    %69 = arith.mulf %67, %68 : vector<2x16xf32>
    %70 = vector.extract_strided_slice %65 {offsets = [0, 1], sizes = [2, 1], strides = [1, 1]} : vector<2x4xf32> to vector<2x1xf32>
    %71 = vector.broadcast %70 : vector<2x1xf32> to vector<2x16xf32>
    %72 = vector.broadcast %9 : vector<1x16xf32> to vector<2x16xf32>
    %73 = arith.mulf %71, %72 : vector<2x16xf32>
    %74 = vector.extract_strided_slice %65 {offsets = [0, 2], sizes = [2, 1], strides = [1, 1]} : vector<2x4xf32> to vector<2x1xf32>
    %75 = vector.broadcast %74 : vector<2x1xf32> to vector<2x16xf32>
    %76 = vector.broadcast %10 : vector<1x16xf32> to vector<2x16xf32>
    %77 = arith.mulf %75, %76 : vector<2x16xf32>
    %78 = vector.extract_strided_slice %65 {offsets = [0, 3], sizes = [2, 1], strides = [1, 1]} : vector<2x4xf32> to vector<2x1xf32>
    %79 = vector.broadcast %78 : vector<2x1xf32> to vector<2x16xf32>
    %80 = vector.broadcast %11 : vector<1x16xf32> to vector<2x16xf32>
    %81 = arith.mulf %79, %80 : vector<2x16xf32>
    %82 = arith.addf %69, %73 : vector<2x16xf32>
    %83 = arith.addf %77, %81 : vector<2x16xf32>
    %84 = arith.addf %82, %83 : vector<2x16xf32>
    %85 = vector.extract_strided_slice %27 {offsets = [0, 16], sizes = [2, 16], strides = [1, 1]} : vector<2x128xf32> to vector<2x16xf32>
    %86 = arith.addf %85, %84 : vector<2x16xf32>
    %87 = math.tanh %86 : vector<2x16xf32>
    %88 = vector.extract_strided_slice %87 {offsets = [0, 0], sizes = [2, 12], strides = [1, 1]} : vector<2x16xf32> to vector<2x12xf32>
    %cst_14 = arith.constant 5.000000e-01 : f32
    %89 = vector.broadcast %cst_14 : f32 to vector<2x12xf32>
    %90 = arith.mulf %89, %88 : vector<2x12xf32>
    %cst_15 = arith.constant 5.000000e-01 : f32
    %91 = vector.broadcast %cst_15 : f32 to vector<2x12xf32>
    %92 = arith.addf %90, %91 : vector<2x12xf32>
    %93 = vector.extract_strided_slice %92 {offsets = [0, 0], sizes = [2, 4], strides = [1, 1]} : vector<2x12xf32> to vector<2x4xf32>
    %94 = vector.extract_strided_slice %92 {offsets = [0, 4], sizes = [2, 4], strides = [1, 1]} : vector<2x12xf32> to vector<2x4xf32>
    %95 = vector.extract_strided_slice %92 {offsets = [0, 8], sizes = [2, 4], strides = [1, 1]} : vector<2x12xf32> to vector<2x4xf32>
    %96 = vector.extract_strided_slice %87 {offsets = [0, 12], sizes = [2, 4], strides = [1, 1]} : vector<2x16xf32> to vector<2x4xf32>
    %97 = arith.mulf %94, %63 : vector<2x4xf32>
    %98 = arith.mulf %93, %96 : vector<2x4xf32>
    %99 = arith.addf %97, %98 : vector<2x4xf32>
    %100 = math.tanh %99 : vector<2x4xf32>
    %101 = arith.mulf %95, %100 : vector<2x4xf32>
    %102 = vector.extract_strided_slice %101 {offsets = [0, 0], sizes = [2, 1], strides = [1, 1]} : vector<2x4xf32> to vector<2x1xf32>
    %103 = vector.broadcast %102 : vector<2x1xf32> to vector<2x16xf32>
    %104 = vector.broadcast %8 : vector<1x16xf32> to vector<2x16xf32>
    %105 = arith.mulf %103, %104 : vector<2x16xf32>
    %106 = vector.extract_strided_slice %101 {offsets = [0, 1], sizes = [2, 1], strides = [1, 1]} : vector<2x4xf32> to vector<2x1xf32>
    %107 = vector.broadcast %106 : vector<2x1xf32> to vector<2x16xf32>
    %108 = vector.broadcast %9 : vector<1x16xf32> to vector<2x16xf32>
    %109 = arith.mulf %107, %108 : vector<2x16xf32>
    %110 = vector.extract_strided_slice %101 {offsets = [0, 2], sizes = [2, 1], strides = [1, 1]} : vector<2x4xf32> to vector<2x1xf32>
    %111 = vector.broadcast %110 : vector<2x1xf32> to vector<2x16xf32>
    %112 = vector.broadcast %10 : vector<1x16xf32> to vector<2x16xf32>
    %113 = arith.mulf %111, %112 : vector<2x16xf32>
    %114 = vector.extract_strided_slice %101 {offsets = [0, 3], sizes = [2, 1], strides = [1, 1]} : vector<2x4xf32> to vector<2x1xf32>
    %115 = vector.broadcast %114 : vector<2x1xf32> to vector<2x16xf32>
    %116 = vector.broadcast %11 : vector<1x16xf32> to vector<2x16xf32>
    %117 = arith.mulf %115, %116 : vector<2x16xf32>
    %118 = arith.addf %105, %109 : vector<2x16xf32>
    %119 = arith.addf %113, %117 : vector<2x16xf32>
    %120 = arith.addf %118, %119 : vector<2x16xf32>
    %121 = vector.extract_strided_slice %27 {offsets = [0, 32], sizes = [2, 16], strides = [1, 1]} : vector<2x128xf32> to vector<2x16xf32>
    %122 = arith.addf %121, %120 : vector<2x16xf32>
    %123 = math.tanh %122 : vector<2x16xf32>
    %124 = vector.extract_strided_slice %123 {offsets = [0, 0], sizes = [2, 12], strides = [1, 1]} : vector<2x16xf32> to vector<2x12xf32>
    %cst_16 = arith.constant 5.000000e-01 : f32
    %125 = vector.broadcast %cst_16 : f32 to vector<2x12xf32>
    %126 = arith.mulf %125, %124 : vector<2x12xf32>
    %cst_17 = arith.constant 5.000000e-01 : f32
    %127 = vector.broadcast %cst_17 : f32 to vector<2x12xf32>
    %128 = arith.addf %126, %127 : vector<2x12xf32>
    %129 = vector.extract_strided_slice %128 {offsets = [0, 0], sizes = [2, 4], strides = [1, 1]} : vector<2x12xf32> to vector<2x4xf32>
    %130 = vector.extract_strided_slice %128 {offsets = [0, 4], sizes = [2, 4], strides = [1, 1]} : vector<2x12xf32> to vector<2x4xf32>
    %131 = vector.extract_strided_slice %128 {offsets = [0, 8], sizes = [2, 4], strides = [1, 1]} : vector<2x12xf32> to vector<2x4xf32>
    %132 = vector.extract_strided_slice %123 {offsets = [0, 12], sizes = [2, 4], strides = [1, 1]} : vector<2x16xf32> to vector<2x4xf32>
    %133 = arith.mulf %130, %99 : vector<2x4xf32>
    %134 = arith.mulf %129, %132 : vector<2x4xf32>
    %135 = arith.addf %133, %134 : vector<2x4xf32>
    %136 = math.tanh %135 : vector<2x4xf32>
    %137 = arith.mulf %131, %136 : vector<2x4xf32>
    %138 = vector.extract_strided_slice %137 {offsets = [0, 0], sizes = [2, 1], strides = [1, 1]} : vector<2x4xf32> to vector<2x1xf32>
    %139 = vector.broadcast %138 : vector<2x1xf32> to vector<2x16xf32>
    %140 = vector.broadcast %8 : vector<1x16xf32> to vector<2x16xf32>
    %141 = arith.mulf %139, %140 : vector<2x16xf32>
    %142 = vector.extract_strided_slice %137 {offsets = [0, 1], sizes = [2, 1], strides = [1, 1]} : vector<2x4xf32> to vector<2x1xf32>
    %143 = vector.broadcast %142 : vector<2x1xf32> to vector<2x16xf32>
    %144 = vector.broadcast %9 : vector<1x16xf32> to vector<2x16xf32>
    %145 = arith.mulf %143, %144 : vector<2x16xf32>
    %146 = vector.extract_strided_slice %137 {offsets = [0, 2], sizes = [2, 1], strides = [1, 1]} : vector<2x4xf32> to vector<2x1xf32>
    %147 = vector.broadcast %146 : vector<2x1xf32> to vector<2x16xf32>
    %148 = vector.broadcast %10 : vector<1x16xf32> to vector<2x16xf32>
    %149 = arith.mulf %147, %148 : vector<2x16xf32>
    %150 = vector.extract_strided_slice %137 {offsets = [0, 3], sizes = [2, 1], strides = [1, 1]} : vector<2x4xf32> to vector<2x1xf32>
    %151 = vector.broadcast %150 : vector<2x1xf32> to vector<2x16xf32>
    %152 = vector.broadcast %11 : vector<1x16xf32> to vector<2x16xf32>
    %153 = arith.mulf %151, %152 : vector<2x16xf32>
    %154 = arith.addf %141, %145 : vector<2x16xf32>
    %155 = arith.addf %149, %153 : vector<2x16xf32>
    %156 = arith.addf %154, %155 : vector<2x16xf32>
    %157 = vector.extract_strided_slice %27 {offsets = [0, 48], sizes = [2, 16], strides = [1, 1]} : vector<2x128xf32> to vector<2x16xf32>
    %158 = arith.addf %157, %156 : vector<2x16xf32>
    %159 = math.tanh %158 : vector<2x16xf32>
    %160 = vector.extract_strided_slice %159 {offsets = [0, 0], sizes = [2, 12], strides = [1, 1]} : vector<2x16xf32> to vector<2x12xf32>
    %cst_18 = arith.constant 5.000000e-01 : f32
    %161 = vector.broadcast %cst_18 : f32 to vector<2x12xf32>
    %162 = arith.mulf %161, %160 : vector<2x12xf32>
    %cst_19 = arith.constant 5.000000e-01 : f32
    %163 = vector.broadcast %cst_19 : f32 to vector<2x12xf32>
    %164 = arith.addf %162, %163 : vector<2x12xf32>
    %165 = vector.extract_strided_slice %164 {offsets = [0, 0], sizes = [2, 4], strides = [1, 1]} : vector<2x12xf32> to vector<2x4xf32>
    %166 = vector.extract_strided_slice %164 {offsets = [0, 4], sizes = [2, 4], strides = [1, 1]} : vector<2x12xf32> to vector<2x4xf32>
    %167 = vector.extract_strided_slice %164 {offsets = [0, 8], sizes = [2, 4], strides = [1, 1]} : vector<2x12xf32> to vector<2x4xf32>
    %168 = vector.extract_strided_slice %159 {offsets = [0, 12], sizes = [2, 4], strides = [1, 1]} : vector<2x16xf32> to vector<2x4xf32>
    %169 = arith.mulf %166, %135 : vector<2x4xf32>
    %170 = arith.mulf %165, %168 : vector<2x4xf32>
    %171 = arith.addf %169, %170 : vector<2x4xf32>
    %172 = math.tanh %171 : vector<2x4xf32>
    %173 = arith.mulf %167, %172 : vector<2x4xf32>
    %174 = vector.extract_strided_slice %173 {offsets = [0, 0], sizes = [2, 1], strides = [1, 1]} : vector<2x4xf32> to vector<2x1xf32>
    %175 = vector.broadcast %174 : vector<2x1xf32> to vector<2x16xf32>
    %176 = vector.broadcast %8 : vector<1x16xf32> to vector<2x16xf32>
    %177 = arith.mulf %175, %176 : vector<2x16xf32>
    %178 = vector.extract_strided_slice %173 {offsets = [0, 1], sizes = [2, 1], strides = [1, 1]} : vector<2x4xf32> to vector<2x1xf32>
    %179 = vector.broadcast %178 : vector<2x1xf32> to vector<2x16xf32>
    %180 = vector.broadcast %9 : vector<1x16xf32> to vector<2x16xf32>
    %181 = arith.mulf %179, %180 : vector<2x16xf32>
    %182 = vector.extract_strided_slice %173 {offsets = [0, 2], sizes = [2, 1], strides = [1, 1]} : vector<2x4xf32> to vector<2x1xf32>
    %183 = vector.broadcast %182 : vector<2x1xf32> to vector<2x16xf32>
    %184 = vector.broadcast %10 : vector<1x16xf32> to vector<2x16xf32>
    %185 = arith.mulf %183, %184 : vector<2x16xf32>
    %186 = vector.extract_strided_slice %173 {offsets = [0, 3], sizes = [2, 1], strides = [1, 1]} : vector<2x4xf32> to vector<2x1xf32>
    %187 = vector.broadcast %186 : vector<2x1xf32> to vector<2x16xf32>
    %188 = vector.broadcast %11 : vector<1x16xf32> to vector<2x16xf32>
    %189 = arith.mulf %187, %188 : vector<2x16xf32>
    %190 = arith.addf %177, %181 : vector<2x16xf32>
    %191 = arith.addf %185, %189 : vector<2x16xf32>
    %192 = arith.addf %190, %191 : vector<2x16xf32>
    %193 = vector.extract_strided_slice %27 {offsets = [0, 64], sizes = [2, 16], strides = [1, 1]} : vector<2x128xf32> to vector<2x16xf32>
    %194 = arith.addf %193, %192 : vector<2x16xf32>
    %195 = math.tanh %194 : vector<2x16xf32>
    %196 = vector.extract_strided_slice %195 {offsets = [0, 0], sizes = [2, 12], strides = [1, 1]} : vector<2x16xf32> to vector<2x12xf32>
    %cst_20 = arith.constant 5.000000e-01 : f32
    %197 = vector.broadcast %cst_20 : f32 to vector<2x12xf32>
    %198 = arith.mulf %197, %196 : vector<2x12xf32>
    %cst_21 = arith.constant 5.000000e-01 : f32
    %199 = vector.broadcast %cst_21 : f32 to vector<2x12xf32>
    %200 = arith.addf %198, %199 : vector<2x12xf32>
    %201 = vector.extract_strided_slice %200 {offsets = [0, 0], sizes = [2, 4], strides = [1, 1]} : vector<2x12xf32> to vector<2x4xf32>
    %202 = vector.extract_strided_slice %200 {offsets = [0, 4], sizes = [2, 4], strides = [1, 1]} : vector<2x12xf32> to vector<2x4xf32>
    %203 = vector.extract_strided_slice %200 {offsets = [0, 8], sizes = [2, 4], strides = [1, 1]} : vector<2x12xf32> to vector<2x4xf32>
    %204 = vector.extract_strided_slice %195 {offsets = [0, 12], sizes = [2, 4], strides = [1, 1]} : vector<2x16xf32> to vector<2x4xf32>
    %205 = arith.mulf %202, %171 : vector<2x4xf32>
    %206 = arith.mulf %201, %204 : vector<2x4xf32>
    %207 = arith.addf %205, %206 : vector<2x4xf32>
    %208 = math.tanh %207 : vector<2x4xf32>
    %209 = arith.mulf %203, %208 : vector<2x4xf32>
    %210 = vector.extract_strided_slice %209 {offsets = [0, 0], sizes = [2, 1], strides = [1, 1]} : vector<2x4xf32> to vector<2x1xf32>
    %211 = vector.broadcast %210 : vector<2x1xf32> to vector<2x16xf32>
    %212 = vector.broadcast %8 : vector<1x16xf32> to vector<2x16xf32>
    %213 = arith.mulf %211, %212 : vector<2x16xf32>
    %214 = vector.extract_strided_slice %209 {offsets = [0, 1], sizes = [2, 1], strides = [1, 1]} : vector<2x4xf32> to vector<2x1xf32>
    %215 = vector.broadcast %214 : vector<2x1xf32> to vector<2x16xf32>
    %216 = vector.broadcast %9 : vector<1x16xf32> to vector<2x16xf32>
    %217 = arith.mulf %215, %216 : vector<2x16xf32>
    %218 = vector.extract_strided_slice %209 {offsets = [0, 2], sizes = [2, 1], strides = [1, 1]} : vector<2x4xf32> to vector<2x1xf32>
    %219 = vector.broadcast %218 : vector<2x1xf32> to vector<2x16xf32>
    %220 = vector.broadcast %10 : vector<1x16xf32> to vector<2x16xf32>
    %221 = arith.mulf %219, %220 : vector<2x16xf32>
    %222 = vector.extract_strided_slice %209 {offsets = [0, 3], sizes = [2, 1], strides = [1, 1]} : vector<2x4xf32> to vector<2x1xf32>
    %223 = vector.broadcast %222 : vector<2x1xf32> to vector<2x16xf32>
    %224 = vector.broadcast %11 : vector<1x16xf32> to vector<2x16xf32>
    %225 = arith.mulf %223, %224 : vector<2x16xf32>
    %226 = arith.addf %213, %217 : vector<2x16xf32>
    %227 = arith.addf %221, %225 : vector<2x16xf32>
    %228 = arith.addf %226, %227 : vector<2x16xf32>
    %229 = vector.extract_strided_slice %27 {offsets = [0, 80], sizes = [2, 16], strides = [1, 1]} : vector<2x128xf32> to vector<2x16xf32>
    %230 = arith.addf %229, %228 : vector<2x16xf32>
    %231 = math.tanh %230 : vector<2x16xf32>
    %232 = vector.extract_strided_slice %231 {offsets = [0, 0], sizes = [2, 12], strides = [1, 1]} : vector<2x16xf32> to vector<2x12xf32>
    %cst_22 = arith.constant 5.000000e-01 : f32
    %233 = vector.broadcast %cst_22 : f32 to vector<2x12xf32>
    %234 = arith.mulf %233, %232 : vector<2x12xf32>
    %cst_23 = arith.constant 5.000000e-01 : f32
    %235 = vector.broadcast %cst_23 : f32 to vector<2x12xf32>
    %236 = arith.addf %234, %235 : vector<2x12xf32>
    %237 = vector.extract_strided_slice %236 {offsets = [0, 0], sizes = [2, 4], strides = [1, 1]} : vector<2x12xf32> to vector<2x4xf32>
    %238 = vector.extract_strided_slice %236 {offsets = [0, 4], sizes = [2, 4], strides = [1, 1]} : vector<2x12xf32> to vector<2x4xf32>
    %239 = vector.extract_strided_slice %236 {offsets = [0, 8], sizes = [2, 4], strides = [1, 1]} : vector<2x12xf32> to vector<2x4xf32>
    %240 = vector.extract_strided_slice %231 {offsets = [0, 12], sizes = [2, 4], strides = [1, 1]} : vector<2x16xf32> to vector<2x4xf32>
    %241 = arith.mulf %238, %207 : vector<2x4xf32>
    %242 = arith.mulf %237, %240 : vector<2x4xf32>
    %243 = arith.addf %241, %242 : vector<2x4xf32>
    %244 = math.tanh %243 : vector<2x4xf32>
    %245 = arith.mulf %239, %244 : vector<2x4xf32>
    %246 = vector.extract_strided_slice %245 {offsets = [0, 0], sizes = [2, 1], strides = [1, 1]} : vector<2x4xf32> to vector<2x1xf32>
    %247 = vector.broadcast %246 : vector<2x1xf32> to vector<2x16xf32>
    %248 = vector.broadcast %8 : vector<1x16xf32> to vector<2x16xf32>
    %249 = arith.mulf %247, %248 : vector<2x16xf32>
    %250 = vector.extract_strided_slice %245 {offsets = [0, 1], sizes = [2, 1], strides = [1, 1]} : vector<2x4xf32> to vector<2x1xf32>
    %251 = vector.broadcast %250 : vector<2x1xf32> to vector<2x16xf32>
    %252 = vector.broadcast %9 : vector<1x16xf32> to vector<2x16xf32>
    %253 = arith.mulf %251, %252 : vector<2x16xf32>
    %254 = vector.extract_strided_slice %245 {offsets = [0, 2], sizes = [2, 1], strides = [1, 1]} : vector<2x4xf32> to vector<2x1xf32>
    %255 = vector.broadcast %254 : vector<2x1xf32> to vector<2x16xf32>
    %256 = vector.broadcast %10 : vector<1x16xf32> to vector<2x16xf32>
    %257 = arith.mulf %255, %256 : vector<2x16xf32>
    %258 = vector.extract_strided_slice %245 {offsets = [0, 3], sizes = [2, 1], strides = [1, 1]} : vector<2x4xf32> to vector<2x1xf32>
    %259 = vector.broadcast %258 : vector<2x1xf32> to vector<2x16xf32>
    %260 = vector.broadcast %11 : vector<1x16xf32> to vector<2x16xf32>
    %261 = arith.mulf %259, %260 : vector<2x16xf32>
    %262 = arith.addf %249, %253 : vector<2x16xf32>
    %263 = arith.addf %257, %261 : vector<2x16xf32>
    %264 = arith.addf %262, %263 : vector<2x16xf32>
    %265 = vector.extract_strided_slice %27 {offsets = [0, 96], sizes = [2, 16], strides = [1, 1]} : vector<2x128xf32> to vector<2x16xf32>
    %266 = arith.addf %265, %264 : vector<2x16xf32>
    %267 = math.tanh %266 : vector<2x16xf32>
    %268 = vector.extract_strided_slice %267 {offsets = [0, 0], sizes = [2, 12], strides = [1, 1]} : vector<2x16xf32> to vector<2x12xf32>
    %cst_24 = arith.constant 5.000000e-01 : f32
    %269 = vector.broadcast %cst_24 : f32 to vector<2x12xf32>
    %270 = arith.mulf %269, %268 : vector<2x12xf32>
    %cst_25 = arith.constant 5.000000e-01 : f32
    %271 = vector.broadcast %cst_25 : f32 to vector<2x12xf32>
    %272 = arith.addf %270, %271 : vector<2x12xf32>
    %273 = vector.extract_strided_slice %272 {offsets = [0, 0], sizes = [2, 4], strides = [1, 1]} : vector<2x12xf32> to vector<2x4xf32>
    %274 = vector.extract_strided_slice %272 {offsets = [0, 4], sizes = [2, 4], strides = [1, 1]} : vector<2x12xf32> to vector<2x4xf32>
    %275 = vector.extract_strided_slice %272 {offsets = [0, 8], sizes = [2, 4], strides = [1, 1]} : vector<2x12xf32> to vector<2x4xf32>
    %276 = vector.extract_strided_slice %267 {offsets = [0, 12], sizes = [2, 4], strides = [1, 1]} : vector<2x16xf32> to vector<2x4xf32>
    %277 = arith.mulf %274, %243 : vector<2x4xf32>
    %278 = arith.mulf %273, %276 : vector<2x4xf32>
    %279 = arith.addf %277, %278 : vector<2x4xf32>
    %280 = math.tanh %279 : vector<2x4xf32>
    %281 = arith.mulf %275, %280 : vector<2x4xf32>
    %282 = vector.extract_strided_slice %281 {offsets = [0, 0], sizes = [2, 1], strides = [1, 1]} : vector<2x4xf32> to vector<2x1xf32>
    %283 = vector.broadcast %282 : vector<2x1xf32> to vector<2x16xf32>
    %284 = vector.broadcast %8 : vector<1x16xf32> to vector<2x16xf32>
    %285 = arith.mulf %283, %284 : vector<2x16xf32>
    %286 = vector.extract_strided_slice %281 {offsets = [0, 1], sizes = [2, 1], strides = [1, 1]} : vector<2x4xf32> to vector<2x1xf32>
    %287 = vector.broadcast %286 : vector<2x1xf32> to vector<2x16xf32>
    %288 = vector.broadcast %9 : vector<1x16xf32> to vector<2x16xf32>
    %289 = arith.mulf %287, %288 : vector<2x16xf32>
    %290 = vector.extract_strided_slice %281 {offsets = [0, 2], sizes = [2, 1], strides = [1, 1]} : vector<2x4xf32> to vector<2x1xf32>
    %291 = vector.broadcast %290 : vector<2x1xf32> to vector<2x16xf32>
    %292 = vector.broadcast %10 : vector<1x16xf32> to vector<2x16xf32>
    %293 = arith.mulf %291, %292 : vector<2x16xf32>
    %294 = vector.extract_strided_slice %281 {offsets = [0, 3], sizes = [2, 1], strides = [1, 1]} : vector<2x4xf32> to vector<2x1xf32>
    %295 = vector.broadcast %294 : vector<2x1xf32> to vector<2x16xf32>
    %296 = vector.broadcast %11 : vector<1x16xf32> to vector<2x16xf32>
    %297 = arith.mulf %295, %296 : vector<2x16xf32>
    %298 = arith.addf %285, %289 : vector<2x16xf32>
    %299 = arith.addf %293, %297 : vector<2x16xf32>
    %300 = arith.addf %298, %299 : vector<2x16xf32>
    %301 = vector.extract_strided_slice %27 {offsets = [0, 112], sizes = [2, 16], strides = [1, 1]} : vector<2x128xf32> to vector<2x16xf32>
    %302 = arith.addf %301, %300 : vector<2x16xf32>
    %303 = math.tanh %302 : vector<2x16xf32>
    %304 = vector.extract_strided_slice %303 {offsets = [0, 0], sizes = [2, 12], strides = [1, 1]} : vector<2x16xf32> to vector<2x12xf32>
    %cst_26 = arith.constant 5.000000e-01 : f32
    %305 = vector.broadcast %cst_26 : f32 to vector<2x12xf32>
    %306 = arith.mulf %305, %304 : vector<2x12xf32>
    %cst_27 = arith.constant 5.000000e-01 : f32
    %307 = vector.broadcast %cst_27 : f32 to vector<2x12xf32>
    %308 = arith.addf %306, %307 : vector<2x12xf32>
    %309 = vector.extract_strided_slice %308 {offsets = [0, 0], sizes = [2, 4], strides = [1, 1]} : vector<2x12xf32> to vector<2x4xf32>
    %310 = vector.extract_strided_slice %308 {offsets = [0, 4], sizes = [2, 4], strides = [1, 1]} : vector<2x12xf32> to vector<2x4xf32>
    %311 = vector.extract_strided_slice %308 {offsets = [0, 8], sizes = [2, 4], strides = [1, 1]} : vector<2x12xf32> to vector<2x4xf32>
    %312 = vector.extract_strided_slice %303 {offsets = [0, 12], sizes = [2, 4], strides = [1, 1]} : vector<2x16xf32> to vector<2x4xf32>
    %313 = arith.mulf %310, %279 : vector<2x4xf32>
    %314 = arith.mulf %309, %312 : vector<2x4xf32>
    %315 = arith.addf %313, %314 : vector<2x4xf32>
    %316 = math.tanh %315 : vector<2x4xf32>
    %317 = arith.mulf %311, %316 : vector<2x4xf32>
    %318 = vector.extract_strided_slice %317 {offsets = [0, 0], sizes = [2, 1], strides = [1, 1]} : vector<2x4xf32> to vector<2x1xf32>
    %319 = vector.broadcast %318 : vector<2x1xf32> to vector<2x32xf32>
    %320 = vector.broadcast %20 : vector<1x32xf32> to vector<2x32xf32>
    %321 = arith.mulf %319, %320 : vector<2x32xf32>
    %322 = vector.extract_strided_slice %317 {offsets = [0, 1], sizes = [2, 1], strides = [1, 1]} : vector<2x4xf32> to vector<2x1xf32>
    %323 = vector.broadcast %322 : vector<2x1xf32> to vector<2x32xf32>
    %324 = vector.broadcast %21 : vector<1x32xf32> to vector<2x32xf32>
    %325 = arith.mulf %323, %324 : vector<2x32xf32>
    %326 = vector.extract_strided_slice %317 {offsets = [0, 2], sizes = [2, 1], strides = [1, 1]} : vector<2x4xf32> to vector<2x1xf32>
    %327 = vector.broadcast %326 : vector<2x1xf32> to vector<2x32xf32>
    %328 = vector.broadcast %22 : vector<1x32xf32> to vector<2x32xf32>
    %329 = arith.mulf %327, %328 : vector<2x32xf32>
    %330 = vector.extract_strided_slice %317 {offsets = [0, 3], sizes = [2, 1], strides = [1, 1]} : vector<2x4xf32> to vector<2x1xf32>
    %331 = vector.broadcast %330 : vector<2x1xf32> to vector<2x32xf32>
    %332 = vector.broadcast %23 : vector<1x32xf32> to vector<2x32xf32>
    %333 = arith.mulf %331, %332 : vector<2x32xf32>
    %334 = arith.addf %321, %325 : vector<2x32xf32>
    %335 = arith.addf %329, %333 : vector<2x32xf32>
    %336 = arith.addf %334, %335 : vector<2x32xf32>
    %337 = vector.broadcast %5 : vector<1x32xf32> to vector<2x32xf32>
    %338 = arith.addf %336, %337 : vector<2x32xf32>
    %cst_28 = arith.constant 0.000000e+00 : f32
    %339 = vector.broadcast %cst_28 : f32 to vector<2x8xf32>
    %cst_29 = arith.constant 0.000000e+00 : f32
    %340 = vector.broadcast %cst_29 : f32 to vector<2x8xf32>
    %341 = vector.extract_strided_slice %339 {offsets = [0, 0], sizes = [2, 1], strides = [1, 1]} : vector<2x8xf32> to vector<2x1xf32>
    %342 = vector.broadcast %341 : vector<2x1xf32> to vector<2x32xf32>
    %343 = vector.broadcast %12 : vector<1x32xf32> to vector<2x32xf32>
    %344 = arith.mulf %342, %343 : vector<2x32xf32>
    %345 = vector.extract_strided_slice %339 {offsets = [0, 1], sizes = [2, 1], strides = [1, 1]} : vector<2x8xf32> to vector<2x1xf32>
    %346 = vector.broadcast %345 : vector<2x1xf32> to vector<2x32xf32>
    %347 = vector.broadcast %13 : vector<1x32xf32> to vector<2x32xf32>
    %348 = arith.mulf %346, %347 : vector<2x32xf32>
    %349 = vector.extract_strided_slice %339 {offsets = [0, 2], sizes = [2, 1], strides = [1, 1]} : vector<2x8xf32> to vector<2x1xf32>
    %350 = vector.broadcast %349 : vector<2x1xf32> to vector<2x32xf32>
    %351 = vector.broadcast %14 : vector<1x32xf32> to vector<2x32xf32>
    %352 = arith.mulf %350, %351 : vector<2x32xf32>
    %353 = vector.extract_strided_slice %339 {offsets = [0, 3], sizes = [2, 1], strides = [1, 1]} : vector<2x8xf32> to vector<2x1xf32>
    %354 = vector.broadcast %353 : vector<2x1xf32> to vector<2x32xf32>
    %355 = vector.broadcast %15 : vector<1x32xf32> to vector<2x32xf32>
    %356 = arith.mulf %354, %355 : vector<2x32xf32>
    %357 = vector.extract_strided_slice %339 {offsets = [0, 4], sizes = [2, 1], strides = [1, 1]} : vector<2x8xf32> to vector<2x1xf32>
    %358 = vector.broadcast %357 : vector<2x1xf32> to vector<2x32xf32>
    %359 = vector.broadcast %16 : vector<1x32xf32> to vector<2x32xf32>
    %360 = arith.mulf %358, %359 : vector<2x32xf32>
    %361 = vector.extract_strided_slice %339 {offsets = [0, 5], sizes = [2, 1], strides = [1, 1]} : vector<2x8xf32> to vector<2x1xf32>
    %362 = vector.broadcast %361 : vector<2x1xf32> to vector<2x32xf32>
    %363 = vector.broadcast %17 : vector<1x32xf32> to vector<2x32xf32>
    %364 = arith.mulf %362, %363 : vector<2x32xf32>
    %365 = vector.extract_strided_slice %339 {offsets = [0, 6], sizes = [2, 1], strides = [1, 1]} : vector<2x8xf32> to vector<2x1xf32>
    %366 = vector.broadcast %365 : vector<2x1xf32> to vector<2x32xf32>
    %367 = vector.broadcast %18 : vector<1x32xf32> to vector<2x32xf32>
    %368 = arith.mulf %366, %367 : vector<2x32xf32>
    %369 = vector.extract_strided_slice %339 {offsets = [0, 7], sizes = [2, 1], strides = [1, 1]} : vector<2x8xf32> to vector<2x1xf32>
    %370 = vector.broadcast %369 : vector<2x1xf32> to vector<2x32xf32>
    %371 = vector.broadcast %19 : vector<1x32xf32> to vector<2x32xf32>
    %372 = arith.mulf %370, %371 : vector<2x32xf32>
    %373 = arith.addf %344, %348 : vector<2x32xf32>
    %374 = arith.addf %352, %356 : vector<2x32xf32>
    %375 = arith.addf %360, %364 : vector<2x32xf32>
    %376 = arith.addf %368, %372 : vector<2x32xf32>
    %377 = arith.addf %373, %374 : vector<2x32xf32>
    %378 = arith.addf %375, %376 : vector<2x32xf32>
    %379 = arith.addf %377, %378 : vector<2x32xf32>
    %380 = arith.addf %338, %379 : vector<2x32xf32>
    %381 = math.tanh %380 : vector<2x32xf32>
    %382 = vector.extract_strided_slice %381 {offsets = [0, 0], sizes = [2, 24], strides = [1, 1]} : vector<2x32xf32> to vector<2x24xf32>
    %cst_30 = arith.constant 5.000000e-01 : f32
    %383 = vector.broadcast %cst_30 : f32 to vector<2x24xf32>
    %384 = arith.mulf %383, %382 : vector<2x24xf32>
    %cst_31 = arith.constant 5.000000e-01 : f32
    %385 = vector.broadcast %cst_31 : f32 to vector<2x24xf32>
    %386 = arith.addf %384, %385 : vector<2x24xf32>
    %387 = vector.extract_strided_slice %386 {offsets = [0, 0], sizes = [2, 8], strides = [1, 1]} : vector<2x24xf32> to vector<2x8xf32>
    %388 = vector.extract_strided_slice %386 {offsets = [0, 8], sizes = [2, 8], strides = [1, 1]} : vector<2x24xf32> to vector<2x8xf32>
    %389 = vector.extract_strided_slice %386 {offsets = [0, 16], sizes = [2, 8], strides = [1, 1]} : vector<2x24xf32> to vector<2x8xf32>
    %390 = vector.extract_strided_slice %381 {offsets = [0, 24], sizes = [2, 8], strides = [1, 1]} : vector<2x32xf32> to vector<2x8xf32>
    %391 = arith.mulf %388, %340 : vector<2x8xf32>
    %392 = arith.mulf %387, %390 : vector<2x8xf32>
    %393 = arith.addf %391, %392 : vector<2x8xf32>
    %394 = math.tanh %393 : vector<2x8xf32>
    %395 = arith.mulf %389, %394 : vector<2x8xf32>
    %396 = vector.extract_strided_slice %395 {offsets = [0, 0], sizes = [2, 1], strides = [1, 1]} : vector<2x8xf32> to vector<2x1xf32>
    %397 = vector.broadcast %396 : vector<2x1xf32> to vector<2x32xf32>
    %398 = vector.broadcast %12 : vector<1x32xf32> to vector<2x32xf32>
    %399 = arith.mulf %397, %398 : vector<2x32xf32>
    %400 = vector.extract_strided_slice %395 {offsets = [0, 1], sizes = [2, 1], strides = [1, 1]} : vector<2x8xf32> to vector<2x1xf32>
    %401 = vector.broadcast %400 : vector<2x1xf32> to vector<2x32xf32>
    %402 = vector.broadcast %13 : vector<1x32xf32> to vector<2x32xf32>
    %403 = arith.mulf %401, %402 : vector<2x32xf32>
    %404 = vector.extract_strided_slice %395 {offsets = [0, 2], sizes = [2, 1], strides = [1, 1]} : vector<2x8xf32> to vector<2x1xf32>
    %405 = vector.broadcast %404 : vector<2x1xf32> to vector<2x32xf32>
    %406 = vector.broadcast %14 : vector<1x32xf32> to vector<2x32xf32>
    %407 = arith.mulf %405, %406 : vector<2x32xf32>
    %408 = vector.extract_strided_slice %395 {offsets = [0, 3], sizes = [2, 1], strides = [1, 1]} : vector<2x8xf32> to vector<2x1xf32>
    %409 = vector.broadcast %408 : vector<2x1xf32> to vector<2x32xf32>
    %410 = vector.broadcast %15 : vector<1x32xf32> to vector<2x32xf32>
    %411 = arith.mulf %409, %410 : vector<2x32xf32>
    %412 = vector.extract_strided_slice %395 {offsets = [0, 4], sizes = [2, 1], strides = [1, 1]} : vector<2x8xf32> to vector<2x1xf32>
    %413 = vector.broadcast %412 : vector<2x1xf32> to vector<2x32xf32>
    %414 = vector.broadcast %16 : vector<1x32xf32> to vector<2x32xf32>
    %415 = arith.mulf %413, %414 : vector<2x32xf32>
    %416 = vector.extract_strided_slice %395 {offsets = [0, 5], sizes = [2, 1], strides = [1, 1]} : vector<2x8xf32> to vector<2x1xf32>
    %417 = vector.broadcast %416 : vector<2x1xf32> to vector<2x32xf32>
    %418 = vector.broadcast %17 : vector<1x32xf32> to vector<2x32xf32>
    %419 = arith.mulf %417, %418 : vector<2x32xf32>
    %420 = vector.extract_strided_slice %395 {offsets = [0, 6], sizes = [2, 1], strides = [1, 1]} : vector<2x8xf32> to vector<2x1xf32>
    %421 = vector.broadcast %420 : vector<2x1xf32> to vector<2x32xf32>
    %422 = vector.broadcast %18 : vector<1x32xf32> to vector<2x32xf32>
    %423 = arith.mulf %421, %422 : vector<2x32xf32>
    %424 = vector.extract_strided_slice %395 {offsets = [0, 7], sizes = [2, 1], strides = [1, 1]} : vector<2x8xf32> to vector<2x1xf32>
    %425 = vector.broadcast %424 : vector<2x1xf32> to vector<2x32xf32>
    %426 = vector.broadcast %19 : vector<1x32xf32> to vector<2x32xf32>
    %427 = arith.mulf %425, %426 : vector<2x32xf32>
    %428 = arith.addf %399, %403 : vector<2x32xf32>
    %429 = arith.addf %407, %411 : vector<2x32xf32>
    %430 = arith.addf %415, %419 : vector<2x32xf32>
    %431 = arith.addf %423, %427 : vector<2x32xf32>
    %432 = arith.addf %428, %429 : vector<2x32xf32>
    %433 = arith.addf %430, %431 : vector<2x32xf32>
    %434 = arith.addf %432, %433 : vector<2x32xf32>
    %435 = arith.addf %338, %434 : vector<2x32xf32>
    %436 = math.tanh %435 : vector<2x32xf32>
    %437 = vector.extract_strided_slice %436 {offsets = [0, 0], sizes = [2, 24], strides = [1, 1]} : vector<2x32xf32> to vector<2x24xf32>
    %cst_32 = arith.constant 5.000000e-01 : f32
    %438 = vector.broadcast %cst_32 : f32 to vector<2x24xf32>
    %439 = arith.mulf %438, %437 : vector<2x24xf32>
    %cst_33 = arith.constant 5.000000e-01 : f32
    %440 = vector.broadcast %cst_33 : f32 to vector<2x24xf32>
    %441 = arith.addf %439, %440 : vector<2x24xf32>
    %442 = vector.extract_strided_slice %441 {offsets = [0, 0], sizes = [2, 8], strides = [1, 1]} : vector<2x24xf32> to vector<2x8xf32>
    %443 = vector.extract_strided_slice %441 {offsets = [0, 8], sizes = [2, 8], strides = [1, 1]} : vector<2x24xf32> to vector<2x8xf32>
    %444 = vector.extract_strided_slice %441 {offsets = [0, 16], sizes = [2, 8], strides = [1, 1]} : vector<2x24xf32> to vector<2x8xf32>
    %445 = vector.extract_strided_slice %436 {offsets = [0, 24], sizes = [2, 8], strides = [1, 1]} : vector<2x32xf32> to vector<2x8xf32>
    %446 = arith.mulf %443, %393 : vector<2x8xf32>
    %447 = arith.mulf %442, %445 : vector<2x8xf32>
    %448 = arith.addf %446, %447 : vector<2x8xf32>
    %449 = math.tanh %448 : vector<2x8xf32>
    %450 = arith.mulf %444, %449 : vector<2x8xf32>
    %451 = vector.extract_strided_slice %450 {offsets = [0, 0], sizes = [2, 1], strides = [1, 1]} : vector<2x8xf32> to vector<2x1xf32>
    %452 = vector.broadcast %451 : vector<2x1xf32> to vector<2x32xf32>
    %453 = vector.broadcast %12 : vector<1x32xf32> to vector<2x32xf32>
    %454 = arith.mulf %452, %453 : vector<2x32xf32>
    %455 = vector.extract_strided_slice %450 {offsets = [0, 1], sizes = [2, 1], strides = [1, 1]} : vector<2x8xf32> to vector<2x1xf32>
    %456 = vector.broadcast %455 : vector<2x1xf32> to vector<2x32xf32>
    %457 = vector.broadcast %13 : vector<1x32xf32> to vector<2x32xf32>
    %458 = arith.mulf %456, %457 : vector<2x32xf32>
    %459 = vector.extract_strided_slice %450 {offsets = [0, 2], sizes = [2, 1], strides = [1, 1]} : vector<2x8xf32> to vector<2x1xf32>
    %460 = vector.broadcast %459 : vector<2x1xf32> to vector<2x32xf32>
    %461 = vector.broadcast %14 : vector<1x32xf32> to vector<2x32xf32>
    %462 = arith.mulf %460, %461 : vector<2x32xf32>
    %463 = vector.extract_strided_slice %450 {offsets = [0, 3], sizes = [2, 1], strides = [1, 1]} : vector<2x8xf32> to vector<2x1xf32>
    %464 = vector.broadcast %463 : vector<2x1xf32> to vector<2x32xf32>
    %465 = vector.broadcast %15 : vector<1x32xf32> to vector<2x32xf32>
    %466 = arith.mulf %464, %465 : vector<2x32xf32>
    %467 = vector.extract_strided_slice %450 {offsets = [0, 4], sizes = [2, 1], strides = [1, 1]} : vector<2x8xf32> to vector<2x1xf32>
    %468 = vector.broadcast %467 : vector<2x1xf32> to vector<2x32xf32>
    %469 = vector.broadcast %16 : vector<1x32xf32> to vector<2x32xf32>
    %470 = arith.mulf %468, %469 : vector<2x32xf32>
    %471 = vector.extract_strided_slice %450 {offsets = [0, 5], sizes = [2, 1], strides = [1, 1]} : vector<2x8xf32> to vector<2x1xf32>
    %472 = vector.broadcast %471 : vector<2x1xf32> to vector<2x32xf32>
    %473 = vector.broadcast %17 : vector<1x32xf32> to vector<2x32xf32>
    %474 = arith.mulf %472, %473 : vector<2x32xf32>
    %475 = vector.extract_strided_slice %450 {offsets = [0, 6], sizes = [2, 1], strides = [1, 1]} : vector<2x8xf32> to vector<2x1xf32>
    %476 = vector.broadcast %475 : vector<2x1xf32> to vector<2x32xf32>
    %477 = vector.broadcast %18 : vector<1x32xf32> to vector<2x32xf32>
    %478 = arith.mulf %476, %477 : vector<2x32xf32>
    %479 = vector.extract_strided_slice %450 {offsets = [0, 7], sizes = [2, 1], strides = [1, 1]} : vector<2x8xf32> to vector<2x1xf32>
    %480 = vector.broadcast %479 : vector<2x1xf32> to vector<2x32xf32>
    %481 = vector.broadcast %19 : vector<1x32xf32> to vector<2x32xf32>
    %482 = arith.mulf %480, %481 : vector<2x32xf32>
    %483 = arith.addf %454, %458 : vector<2x32xf32>
    %484 = arith.addf %462, %466 : vector<2x32xf32>
    %485 = arith.addf %470, %474 : vector<2x32xf32>
    %486 = arith.addf %478, %482 : vector<2x32xf32>
    %487 = arith.addf %483, %484 : vector<2x32xf32>
    %488 = arith.addf %485, %486 : vector<2x32xf32>
    %489 = arith.addf %487, %488 : vector<2x32xf32>
    %490 = arith.addf %338, %489 : vector<2x32xf32>
    %491 = math.tanh %490 : vector<2x32xf32>
    %492 = vector.extract_strided_slice %491 {offsets = [0, 0], sizes = [2, 24], strides = [1, 1]} : vector<2x32xf32> to vector<2x24xf32>
    %cst_34 = arith.constant 5.000000e-01 : f32
    %493 = vector.broadcast %cst_34 : f32 to vector<2x24xf32>
    %494 = arith.mulf %493, %492 : vector<2x24xf32>
    %cst_35 = arith.constant 5.000000e-01 : f32
    %495 = vector.broadcast %cst_35 : f32 to vector<2x24xf32>
    %496 = arith.addf %494, %495 : vector<2x24xf32>
    %497 = vector.extract_strided_slice %496 {offsets = [0, 0], sizes = [2, 8], strides = [1, 1]} : vector<2x24xf32> to vector<2x8xf32>
    %498 = vector.extract_strided_slice %496 {offsets = [0, 8], sizes = [2, 8], strides = [1, 1]} : vector<2x24xf32> to vector<2x8xf32>
    %499 = vector.extract_strided_slice %496 {offsets = [0, 16], sizes = [2, 8], strides = [1, 1]} : vector<2x24xf32> to vector<2x8xf32>
    %500 = vector.extract_strided_slice %491 {offsets = [0, 24], sizes = [2, 8], strides = [1, 1]} : vector<2x32xf32> to vector<2x8xf32>
    %501 = arith.mulf %498, %448 : vector<2x8xf32>
    %502 = arith.mulf %497, %500 : vector<2x8xf32>
    %503 = arith.addf %501, %502 : vector<2x8xf32>
    %504 = math.tanh %503 : vector<2x8xf32>
    %505 = arith.mulf %499, %504 : vector<2x8xf32>
    %506 = vector.extract_strided_slice %505 {offsets = [0, 0], sizes = [2, 1], strides = [1, 1]} : vector<2x8xf32> to vector<2x1xf32>
    %507 = vector.broadcast %506 : vector<2x1xf32> to vector<2x32xf32>
    %508 = vector.broadcast %12 : vector<1x32xf32> to vector<2x32xf32>
    %509 = arith.mulf %507, %508 : vector<2x32xf32>
    %510 = vector.extract_strided_slice %505 {offsets = [0, 1], sizes = [2, 1], strides = [1, 1]} : vector<2x8xf32> to vector<2x1xf32>
    %511 = vector.broadcast %510 : vector<2x1xf32> to vector<2x32xf32>
    %512 = vector.broadcast %13 : vector<1x32xf32> to vector<2x32xf32>
    %513 = arith.mulf %511, %512 : vector<2x32xf32>
    %514 = vector.extract_strided_slice %505 {offsets = [0, 2], sizes = [2, 1], strides = [1, 1]} : vector<2x8xf32> to vector<2x1xf32>
    %515 = vector.broadcast %514 : vector<2x1xf32> to vector<2x32xf32>
    %516 = vector.broadcast %14 : vector<1x32xf32> to vector<2x32xf32>
    %517 = arith.mulf %515, %516 : vector<2x32xf32>
    %518 = vector.extract_strided_slice %505 {offsets = [0, 3], sizes = [2, 1], strides = [1, 1]} : vector<2x8xf32> to vector<2x1xf32>
    %519 = vector.broadcast %518 : vector<2x1xf32> to vector<2x32xf32>
    %520 = vector.broadcast %15 : vector<1x32xf32> to vector<2x32xf32>
    %521 = arith.mulf %519, %520 : vector<2x32xf32>
    %522 = vector.extract_strided_slice %505 {offsets = [0, 4], sizes = [2, 1], strides = [1, 1]} : vector<2x8xf32> to vector<2x1xf32>
    %523 = vector.broadcast %522 : vector<2x1xf32> to vector<2x32xf32>
    %524 = vector.broadcast %16 : vector<1x32xf32> to vector<2x32xf32>
    %525 = arith.mulf %523, %524 : vector<2x32xf32>
    %526 = vector.extract_strided_slice %505 {offsets = [0, 5], sizes = [2, 1], strides = [1, 1]} : vector<2x8xf32> to vector<2x1xf32>
    %527 = vector.broadcast %526 : vector<2x1xf32> to vector<2x32xf32>
    %528 = vector.broadcast %17 : vector<1x32xf32> to vector<2x32xf32>
    %529 = arith.mulf %527, %528 : vector<2x32xf32>
    %530 = vector.extract_strided_slice %505 {offsets = [0, 6], sizes = [2, 1], strides = [1, 1]} : vector<2x8xf32> to vector<2x1xf32>
    %531 = vector.broadcast %530 : vector<2x1xf32> to vector<2x32xf32>
    %532 = vector.broadcast %18 : vector<1x32xf32> to vector<2x32xf32>
    %533 = arith.mulf %531, %532 : vector<2x32xf32>
    %534 = vector.extract_strided_slice %505 {offsets = [0, 7], sizes = [2, 1], strides = [1, 1]} : vector<2x8xf32> to vector<2x1xf32>
    %535 = vector.broadcast %534 : vector<2x1xf32> to vector<2x32xf32>
    %536 = vector.broadcast %19 : vector<1x32xf32> to vector<2x32xf32>
    %537 = arith.mulf %535, %536 : vector<2x32xf32>
    %538 = arith.addf %509, %513 : vector<2x32xf32>
    %539 = arith.addf %517, %521 : vector<2x32xf32>
    %540 = arith.addf %525, %529 : vector<2x32xf32>
    %541 = arith.addf %533, %537 : vector<2x32xf32>
    %542 = arith.addf %538, %539 : vector<2x32xf32>
    %543 = arith.addf %540, %541 : vector<2x32xf32>
    %544 = arith.addf %542, %543 : vector<2x32xf32>
    %545 = arith.addf %338, %544 : vector<2x32xf32>
    %546 = math.tanh %545 : vector<2x32xf32>
    %547 = vector.extract_strided_slice %546 {offsets = [0, 0], sizes = [2, 24], strides = [1, 1]} : vector<2x32xf32> to vector<2x24xf32>
    %cst_36 = arith.constant 5.000000e-01 : f32
    %548 = vector.broadcast %cst_36 : f32 to vector<2x24xf32>
    %549 = arith.mulf %548, %547 : vector<2x24xf32>
    %cst_37 = arith.constant 5.000000e-01 : f32
    %550 = vector.broadcast %cst_37 : f32 to vector<2x24xf32>
    %551 = arith.addf %549, %550 : vector<2x24xf32>
    %552 = vector.extract_strided_slice %551 {offsets = [0, 0], sizes = [2, 8], strides = [1, 1]} : vector<2x24xf32> to vector<2x8xf32>
    %553 = vector.extract_strided_slice %551 {offsets = [0, 8], sizes = [2, 8], strides = [1, 1]} : vector<2x24xf32> to vector<2x8xf32>
    %554 = vector.extract_strided_slice %551 {offsets = [0, 16], sizes = [2, 8], strides = [1, 1]} : vector<2x24xf32> to vector<2x8xf32>
    %555 = vector.extract_strided_slice %546 {offsets = [0, 24], sizes = [2, 8], strides = [1, 1]} : vector<2x32xf32> to vector<2x8xf32>
    %556 = arith.mulf %553, %503 : vector<2x8xf32>
    %557 = arith.mulf %552, %555 : vector<2x8xf32>
    %558 = arith.addf %556, %557 : vector<2x8xf32>
    %559 = math.tanh %558 : vector<2x8xf32>
    %560 = arith.mulf %554, %559 : vector<2x8xf32>
    %561 = vector.extract_strided_slice %560 {offsets = [0, 0], sizes = [2, 1], strides = [1, 1]} : vector<2x8xf32> to vector<2x1xf32>
    %562 = vector.broadcast %561 : vector<2x1xf32> to vector<2x32xf32>
    %563 = vector.broadcast %12 : vector<1x32xf32> to vector<2x32xf32>
    %564 = arith.mulf %562, %563 : vector<2x32xf32>
    %565 = vector.extract_strided_slice %560 {offsets = [0, 1], sizes = [2, 1], strides = [1, 1]} : vector<2x8xf32> to vector<2x1xf32>
    %566 = vector.broadcast %565 : vector<2x1xf32> to vector<2x32xf32>
    %567 = vector.broadcast %13 : vector<1x32xf32> to vector<2x32xf32>
    %568 = arith.mulf %566, %567 : vector<2x32xf32>
    %569 = vector.extract_strided_slice %560 {offsets = [0, 2], sizes = [2, 1], strides = [1, 1]} : vector<2x8xf32> to vector<2x1xf32>
    %570 = vector.broadcast %569 : vector<2x1xf32> to vector<2x32xf32>
    %571 = vector.broadcast %14 : vector<1x32xf32> to vector<2x32xf32>
    %572 = arith.mulf %570, %571 : vector<2x32xf32>
    %573 = vector.extract_strided_slice %560 {offsets = [0, 3], sizes = [2, 1], strides = [1, 1]} : vector<2x8xf32> to vector<2x1xf32>
    %574 = vector.broadcast %573 : vector<2x1xf32> to vector<2x32xf32>
    %575 = vector.broadcast %15 : vector<1x32xf32> to vector<2x32xf32>
    %576 = arith.mulf %574, %575 : vector<2x32xf32>
    %577 = vector.extract_strided_slice %560 {offsets = [0, 4], sizes = [2, 1], strides = [1, 1]} : vector<2x8xf32> to vector<2x1xf32>
    %578 = vector.broadcast %577 : vector<2x1xf32> to vector<2x32xf32>
    %579 = vector.broadcast %16 : vector<1x32xf32> to vector<2x32xf32>
    %580 = arith.mulf %578, %579 : vector<2x32xf32>
    %581 = vector.extract_strided_slice %560 {offsets = [0, 5], sizes = [2, 1], strides = [1, 1]} : vector<2x8xf32> to vector<2x1xf32>
    %582 = vector.broadcast %581 : vector<2x1xf32> to vector<2x32xf32>
    %583 = vector.broadcast %17 : vector<1x32xf32> to vector<2x32xf32>
    %584 = arith.mulf %582, %583 : vector<2x32xf32>
    %585 = vector.extract_strided_slice %560 {offsets = [0, 6], sizes = [2, 1], strides = [1, 1]} : vector<2x8xf32> to vector<2x1xf32>
    %586 = vector.broadcast %585 : vector<2x1xf32> to vector<2x32xf32>
    %587 = vector.broadcast %18 : vector<1x32xf32> to vector<2x32xf32>
    %588 = arith.mulf %586, %587 : vector<2x32xf32>
    %589 = vector.extract_strided_slice %560 {offsets = [0, 7], sizes = [2, 1], strides = [1, 1]} : vector<2x8xf32> to vector<2x1xf32>
    %590 = vector.broadcast %589 : vector<2x1xf32> to vector<2x32xf32>
    %591 = vector.broadcast %19 : vector<1x32xf32> to vector<2x32xf32>
    %592 = arith.mulf %590, %591 : vector<2x32xf32>
    %593 = arith.addf %564, %568 : vector<2x32xf32>
    %594 = arith.addf %572, %576 : vector<2x32xf32>
    %595 = arith.addf %580, %584 : vector<2x32xf32>
    %596 = arith.addf %588, %592 : vector<2x32xf32>
    %597 = arith.addf %593, %594 : vector<2x32xf32>
    %598 = arith.addf %595, %596 : vector<2x32xf32>
    %599 = arith.addf %597, %598 : vector<2x32xf32>
    %600 = arith.addf %338, %599 : vector<2x32xf32>
    %601 = math.tanh %600 : vector<2x32xf32>
    %602 = vector.extract_strided_slice %601 {offsets = [0, 0], sizes = [2, 24], strides = [1, 1]} : vector<2x32xf32> to vector<2x24xf32>
    %cst_38 = arith.constant 5.000000e-01 : f32
    %603 = vector.broadcast %cst_38 : f32 to vector<2x24xf32>
    %604 = arith.mulf %603, %602 : vector<2x24xf32>
    %cst_39 = arith.constant 5.000000e-01 : f32
    %605 = vector.broadcast %cst_39 : f32 to vector<2x24xf32>
    %606 = arith.addf %604, %605 : vector<2x24xf32>
    %607 = vector.extract_strided_slice %606 {offsets = [0, 0], sizes = [2, 8], strides = [1, 1]} : vector<2x24xf32> to vector<2x8xf32>
    %608 = vector.extract_strided_slice %606 {offsets = [0, 8], sizes = [2, 8], strides = [1, 1]} : vector<2x24xf32> to vector<2x8xf32>
    %609 = vector.extract_strided_slice %606 {offsets = [0, 16], sizes = [2, 8], strides = [1, 1]} : vector<2x24xf32> to vector<2x8xf32>
    %610 = vector.extract_strided_slice %601 {offsets = [0, 24], sizes = [2, 8], strides = [1, 1]} : vector<2x32xf32> to vector<2x8xf32>
    %611 = arith.mulf %608, %558 : vector<2x8xf32>
    %612 = arith.mulf %607, %610 : vector<2x8xf32>
    %613 = arith.addf %611, %612 : vector<2x8xf32>
    %614 = math.tanh %613 : vector<2x8xf32>
    %615 = arith.mulf %609, %614 : vector<2x8xf32>
    %616 = vector.extract_strided_slice %615 {offsets = [0, 0], sizes = [2, 1], strides = [1, 1]} : vector<2x8xf32> to vector<2x1xf32>
    %617 = vector.broadcast %616 : vector<2x1xf32> to vector<2x32xf32>
    %618 = vector.broadcast %12 : vector<1x32xf32> to vector<2x32xf32>
    %619 = arith.mulf %617, %618 : vector<2x32xf32>
    %620 = vector.extract_strided_slice %615 {offsets = [0, 1], sizes = [2, 1], strides = [1, 1]} : vector<2x8xf32> to vector<2x1xf32>
    %621 = vector.broadcast %620 : vector<2x1xf32> to vector<2x32xf32>
    %622 = vector.broadcast %13 : vector<1x32xf32> to vector<2x32xf32>
    %623 = arith.mulf %621, %622 : vector<2x32xf32>
    %624 = vector.extract_strided_slice %615 {offsets = [0, 2], sizes = [2, 1], strides = [1, 1]} : vector<2x8xf32> to vector<2x1xf32>
    %625 = vector.broadcast %624 : vector<2x1xf32> to vector<2x32xf32>
    %626 = vector.broadcast %14 : vector<1x32xf32> to vector<2x32xf32>
    %627 = arith.mulf %625, %626 : vector<2x32xf32>
    %628 = vector.extract_strided_slice %615 {offsets = [0, 3], sizes = [2, 1], strides = [1, 1]} : vector<2x8xf32> to vector<2x1xf32>
    %629 = vector.broadcast %628 : vector<2x1xf32> to vector<2x32xf32>
    %630 = vector.broadcast %15 : vector<1x32xf32> to vector<2x32xf32>
    %631 = arith.mulf %629, %630 : vector<2x32xf32>
    %632 = vector.extract_strided_slice %615 {offsets = [0, 4], sizes = [2, 1], strides = [1, 1]} : vector<2x8xf32> to vector<2x1xf32>
    %633 = vector.broadcast %632 : vector<2x1xf32> to vector<2x32xf32>
    %634 = vector.broadcast %16 : vector<1x32xf32> to vector<2x32xf32>
    %635 = arith.mulf %633, %634 : vector<2x32xf32>
    %636 = vector.extract_strided_slice %615 {offsets = [0, 5], sizes = [2, 1], strides = [1, 1]} : vector<2x8xf32> to vector<2x1xf32>
    %637 = vector.broadcast %636 : vector<2x1xf32> to vector<2x32xf32>
    %638 = vector.broadcast %17 : vector<1x32xf32> to vector<2x32xf32>
    %639 = arith.mulf %637, %638 : vector<2x32xf32>
    %640 = vector.extract_strided_slice %615 {offsets = [0, 6], sizes = [2, 1], strides = [1, 1]} : vector<2x8xf32> to vector<2x1xf32>
    %641 = vector.broadcast %640 : vector<2x1xf32> to vector<2x32xf32>
    %642 = vector.broadcast %18 : vector<1x32xf32> to vector<2x32xf32>
    %643 = arith.mulf %641, %642 : vector<2x32xf32>
    %644 = vector.extract_strided_slice %615 {offsets = [0, 7], sizes = [2, 1], strides = [1, 1]} : vector<2x8xf32> to vector<2x1xf32>
    %645 = vector.broadcast %644 : vector<2x1xf32> to vector<2x32xf32>
    %646 = vector.broadcast %19 : vector<1x32xf32> to vector<2x32xf32>
    %647 = arith.mulf %645, %646 : vector<2x32xf32>
    %648 = arith.addf %619, %623 : vector<2x32xf32>
    %649 = arith.addf %627, %631 : vector<2x32xf32>
    %650 = arith.addf %635, %639 : vector<2x32xf32>
    %651 = arith.addf %643, %647 : vector<2x32xf32>
    %652 = arith.addf %648, %649 : vector<2x32xf32>
    %653 = arith.addf %650, %651 : vector<2x32xf32>
    %654 = arith.addf %652, %653 : vector<2x32xf32>
    %655 = arith.addf %338, %654 : vector<2x32xf32>
    %656 = math.tanh %655 : vector<2x32xf32>
    %657 = vector.extract_strided_slice %656 {offsets = [0, 0], sizes = [2, 24], strides = [1, 1]} : vector<2x32xf32> to vector<2x24xf32>
    %cst_40 = arith.constant 5.000000e-01 : f32
    %658 = vector.broadcast %cst_40 : f32 to vector<2x24xf32>
    %659 = arith.mulf %658, %657 : vector<2x24xf32>
    %cst_41 = arith.constant 5.000000e-01 : f32
    %660 = vector.broadcast %cst_41 : f32 to vector<2x24xf32>
    %661 = arith.addf %659, %660 : vector<2x24xf32>
    %662 = vector.extract_strided_slice %661 {offsets = [0, 0], sizes = [2, 8], strides = [1, 1]} : vector<2x24xf32> to vector<2x8xf32>
    %663 = vector.extract_strided_slice %661 {offsets = [0, 8], sizes = [2, 8], strides = [1, 1]} : vector<2x24xf32> to vector<2x8xf32>
    %664 = vector.extract_strided_slice %661 {offsets = [0, 16], sizes = [2, 8], strides = [1, 1]} : vector<2x24xf32> to vector<2x8xf32>
    %665 = vector.extract_strided_slice %656 {offsets = [0, 24], sizes = [2, 8], strides = [1, 1]} : vector<2x32xf32> to vector<2x8xf32>
    %666 = arith.mulf %663, %613 : vector<2x8xf32>
    %667 = arith.mulf %662, %665 : vector<2x8xf32>
    %668 = arith.addf %666, %667 : vector<2x8xf32>
    %669 = math.tanh %668 : vector<2x8xf32>
    %670 = arith.mulf %664, %669 : vector<2x8xf32>
    %671 = vector.extract_strided_slice %670 {offsets = [0, 0], sizes = [2, 1], strides = [1, 1]} : vector<2x8xf32> to vector<2x1xf32>
    %672 = vector.broadcast %671 : vector<2x1xf32> to vector<2x32xf32>
    %673 = vector.broadcast %12 : vector<1x32xf32> to vector<2x32xf32>
    %674 = arith.mulf %672, %673 : vector<2x32xf32>
    %675 = vector.extract_strided_slice %670 {offsets = [0, 1], sizes = [2, 1], strides = [1, 1]} : vector<2x8xf32> to vector<2x1xf32>
    %676 = vector.broadcast %675 : vector<2x1xf32> to vector<2x32xf32>
    %677 = vector.broadcast %13 : vector<1x32xf32> to vector<2x32xf32>
    %678 = arith.mulf %676, %677 : vector<2x32xf32>
    %679 = vector.extract_strided_slice %670 {offsets = [0, 2], sizes = [2, 1], strides = [1, 1]} : vector<2x8xf32> to vector<2x1xf32>
    %680 = vector.broadcast %679 : vector<2x1xf32> to vector<2x32xf32>
    %681 = vector.broadcast %14 : vector<1x32xf32> to vector<2x32xf32>
    %682 = arith.mulf %680, %681 : vector<2x32xf32>
    %683 = vector.extract_strided_slice %670 {offsets = [0, 3], sizes = [2, 1], strides = [1, 1]} : vector<2x8xf32> to vector<2x1xf32>
    %684 = vector.broadcast %683 : vector<2x1xf32> to vector<2x32xf32>
    %685 = vector.broadcast %15 : vector<1x32xf32> to vector<2x32xf32>
    %686 = arith.mulf %684, %685 : vector<2x32xf32>
    %687 = vector.extract_strided_slice %670 {offsets = [0, 4], sizes = [2, 1], strides = [1, 1]} : vector<2x8xf32> to vector<2x1xf32>
    %688 = vector.broadcast %687 : vector<2x1xf32> to vector<2x32xf32>
    %689 = vector.broadcast %16 : vector<1x32xf32> to vector<2x32xf32>
    %690 = arith.mulf %688, %689 : vector<2x32xf32>
    %691 = vector.extract_strided_slice %670 {offsets = [0, 5], sizes = [2, 1], strides = [1, 1]} : vector<2x8xf32> to vector<2x1xf32>
    %692 = vector.broadcast %691 : vector<2x1xf32> to vector<2x32xf32>
    %693 = vector.broadcast %17 : vector<1x32xf32> to vector<2x32xf32>
    %694 = arith.mulf %692, %693 : vector<2x32xf32>
    %695 = vector.extract_strided_slice %670 {offsets = [0, 6], sizes = [2, 1], strides = [1, 1]} : vector<2x8xf32> to vector<2x1xf32>
    %696 = vector.broadcast %695 : vector<2x1xf32> to vector<2x32xf32>
    %697 = vector.broadcast %18 : vector<1x32xf32> to vector<2x32xf32>
    %698 = arith.mulf %696, %697 : vector<2x32xf32>
    %699 = vector.extract_strided_slice %670 {offsets = [0, 7], sizes = [2, 1], strides = [1, 1]} : vector<2x8xf32> to vector<2x1xf32>
    %700 = vector.broadcast %699 : vector<2x1xf32> to vector<2x32xf32>
    %701 = vector.broadcast %19 : vector<1x32xf32> to vector<2x32xf32>
    %702 = arith.mulf %700, %701 : vector<2x32xf32>
    %703 = arith.addf %674, %678 : vector<2x32xf32>
    %704 = arith.addf %682, %686 : vector<2x32xf32>
    %705 = arith.addf %690, %694 : vector<2x32xf32>
    %706 = arith.addf %698, %702 : vector<2x32xf32>
    %707 = arith.addf %703, %704 : vector<2x32xf32>
    %708 = arith.addf %705, %706 : vector<2x32xf32>
    %709 = arith.addf %707, %708 : vector<2x32xf32>
    %710 = arith.addf %338, %709 : vector<2x32xf32>
    %711 = math.tanh %710 : vector<2x32xf32>
    %712 = vector.extract_strided_slice %711 {offsets = [0, 0], sizes = [2, 24], strides = [1, 1]} : vector<2x32xf32> to vector<2x24xf32>
    %cst_42 = arith.constant 5.000000e-01 : f32
    %713 = vector.broadcast %cst_42 : f32 to vector<2x24xf32>
    %714 = arith.mulf %713, %712 : vector<2x24xf32>
    %cst_43 = arith.constant 5.000000e-01 : f32
    %715 = vector.broadcast %cst_43 : f32 to vector<2x24xf32>
    %716 = arith.addf %714, %715 : vector<2x24xf32>
    %717 = vector.extract_strided_slice %716 {offsets = [0, 0], sizes = [2, 8], strides = [1, 1]} : vector<2x24xf32> to vector<2x8xf32>
    %718 = vector.extract_strided_slice %716 {offsets = [0, 8], sizes = [2, 8], strides = [1, 1]} : vector<2x24xf32> to vector<2x8xf32>
    %719 = vector.extract_strided_slice %716 {offsets = [0, 16], sizes = [2, 8], strides = [1, 1]} : vector<2x24xf32> to vector<2x8xf32>
    %720 = vector.extract_strided_slice %711 {offsets = [0, 24], sizes = [2, 8], strides = [1, 1]} : vector<2x32xf32> to vector<2x8xf32>
    %721 = arith.mulf %718, %668 : vector<2x8xf32>
    %722 = arith.mulf %717, %720 : vector<2x8xf32>
    %723 = arith.addf %721, %722 : vector<2x8xf32>
    %724 = math.tanh %723 : vector<2x8xf32>
    %725 = arith.mulf %719, %724 : vector<2x8xf32>
    %726 = vector.extract_strided_slice %725 {offsets = [0, 0], sizes = [2, 1], strides = [1, 1]} : vector<2x8xf32> to vector<2x1xf32>
    %727 = vector.broadcast %726 : vector<2x1xf32> to vector<2x32xf32>
    %728 = vector.broadcast %12 : vector<1x32xf32> to vector<2x32xf32>
    %729 = arith.mulf %727, %728 : vector<2x32xf32>
    %730 = vector.extract_strided_slice %725 {offsets = [0, 1], sizes = [2, 1], strides = [1, 1]} : vector<2x8xf32> to vector<2x1xf32>
    %731 = vector.broadcast %730 : vector<2x1xf32> to vector<2x32xf32>
    %732 = vector.broadcast %13 : vector<1x32xf32> to vector<2x32xf32>
    %733 = arith.mulf %731, %732 : vector<2x32xf32>
    %734 = vector.extract_strided_slice %725 {offsets = [0, 2], sizes = [2, 1], strides = [1, 1]} : vector<2x8xf32> to vector<2x1xf32>
    %735 = vector.broadcast %734 : vector<2x1xf32> to vector<2x32xf32>
    %736 = vector.broadcast %14 : vector<1x32xf32> to vector<2x32xf32>
    %737 = arith.mulf %735, %736 : vector<2x32xf32>
    %738 = vector.extract_strided_slice %725 {offsets = [0, 3], sizes = [2, 1], strides = [1, 1]} : vector<2x8xf32> to vector<2x1xf32>
    %739 = vector.broadcast %738 : vector<2x1xf32> to vector<2x32xf32>
    %740 = vector.broadcast %15 : vector<1x32xf32> to vector<2x32xf32>
    %741 = arith.mulf %739, %740 : vector<2x32xf32>
    %742 = vector.extract_strided_slice %725 {offsets = [0, 4], sizes = [2, 1], strides = [1, 1]} : vector<2x8xf32> to vector<2x1xf32>
    %743 = vector.broadcast %742 : vector<2x1xf32> to vector<2x32xf32>
    %744 = vector.broadcast %16 : vector<1x32xf32> to vector<2x32xf32>
    %745 = arith.mulf %743, %744 : vector<2x32xf32>
    %746 = vector.extract_strided_slice %725 {offsets = [0, 5], sizes = [2, 1], strides = [1, 1]} : vector<2x8xf32> to vector<2x1xf32>
    %747 = vector.broadcast %746 : vector<2x1xf32> to vector<2x32xf32>
    %748 = vector.broadcast %17 : vector<1x32xf32> to vector<2x32xf32>
    %749 = arith.mulf %747, %748 : vector<2x32xf32>
    %750 = vector.extract_strided_slice %725 {offsets = [0, 6], sizes = [2, 1], strides = [1, 1]} : vector<2x8xf32> to vector<2x1xf32>
    %751 = vector.broadcast %750 : vector<2x1xf32> to vector<2x32xf32>
    %752 = vector.broadcast %18 : vector<1x32xf32> to vector<2x32xf32>
    %753 = arith.mulf %751, %752 : vector<2x32xf32>
    %754 = vector.extract_strided_slice %725 {offsets = [0, 7], sizes = [2, 1], strides = [1, 1]} : vector<2x8xf32> to vector<2x1xf32>
    %755 = vector.broadcast %754 : vector<2x1xf32> to vector<2x32xf32>
    %756 = vector.broadcast %19 : vector<1x32xf32> to vector<2x32xf32>
    %757 = arith.mulf %755, %756 : vector<2x32xf32>
    %758 = arith.addf %729, %733 : vector<2x32xf32>
    %759 = arith.addf %737, %741 : vector<2x32xf32>
    %760 = arith.addf %745, %749 : vector<2x32xf32>
    %761 = arith.addf %753, %757 : vector<2x32xf32>
    %762 = arith.addf %758, %759 : vector<2x32xf32>
    %763 = arith.addf %760, %761 : vector<2x32xf32>
    %764 = arith.addf %762, %763 : vector<2x32xf32>
    %765 = arith.addf %338, %764 : vector<2x32xf32>
    %766 = math.tanh %765 : vector<2x32xf32>
    %767 = vector.extract_strided_slice %766 {offsets = [0, 0], sizes = [2, 24], strides = [1, 1]} : vector<2x32xf32> to vector<2x24xf32>
    %cst_44 = arith.constant 5.000000e-01 : f32
    %768 = vector.broadcast %cst_44 : f32 to vector<2x24xf32>
    %769 = arith.mulf %768, %767 : vector<2x24xf32>
    %cst_45 = arith.constant 5.000000e-01 : f32
    %770 = vector.broadcast %cst_45 : f32 to vector<2x24xf32>
    %771 = arith.addf %769, %770 : vector<2x24xf32>
    %772 = vector.extract_strided_slice %771 {offsets = [0, 0], sizes = [2, 8], strides = [1, 1]} : vector<2x24xf32> to vector<2x8xf32>
    %773 = vector.extract_strided_slice %771 {offsets = [0, 8], sizes = [2, 8], strides = [1, 1]} : vector<2x24xf32> to vector<2x8xf32>
    %774 = vector.extract_strided_slice %771 {offsets = [0, 16], sizes = [2, 8], strides = [1, 1]} : vector<2x24xf32> to vector<2x8xf32>
    %775 = vector.extract_strided_slice %766 {offsets = [0, 24], sizes = [2, 8], strides = [1, 1]} : vector<2x32xf32> to vector<2x8xf32>
    %776 = arith.mulf %773, %723 : vector<2x8xf32>
    %777 = arith.mulf %772, %775 : vector<2x8xf32>
    %778 = arith.addf %776, %777 : vector<2x8xf32>
    %779 = math.tanh %778 : vector<2x8xf32>
    %780 = arith.mulf %774, %779 : vector<2x8xf32>
    %781 = tpu.concatenate %395, %450, %505, %560, %615, %670, %725, %780 in 1 : vector<2x8xf32>, vector<2x8xf32>, vector<2x8xf32>, vector<2x8xf32>, vector<2x8xf32>, vector<2x8xf32>, vector<2x8xf32>, vector<2x8xf32> -> vector<2x64xf32>
    %cst_46 = arith.constant dense<0.000000e+00> : vector<2x32xf32>
    %782 = tpu.matmul %781, %6, %cst_46 {dimension_numbers = #tpu.dot_dimension_numbers<[1], [0], [0], [1], [0, 0, 1, 1], [], []>} : vector<2x64xf32>, vector<64x32xf32>, vector<2x32xf32> -> vector<2x32xf32>
    %783 = vector.broadcast %7 : vector<1x32xf32> to vector<2x32xf32>
    %784 = arith.addf %782, %783 : vector<2x32xf32>
    %c0_47 = arith.constant 0 : index
    %c0_48 = arith.constant 0 : index
    %785 = vector.load %arg2[%c0_47, %c0_48] : memref<2x32xf32, #tpu.memory_space<vmem>>, vector<2x32xf32>
    tpu.vector_store %arg2[%c0_47, %c0_48], %784 {strides = array<i32>} : memref<2x32xf32, #tpu.memory_space<vmem>>, vector<2x32xf32>,
    %c0_49 = arith.constant 0 : index
    %c0_50 = arith.constant 0 : index
    %786 = vector.load %arg3[%c0_49, %c0_50] : memref<2x8xf32, #tpu.memory_space<vmem>>, vector<2x8xf32>
    tpu.vector_store %arg3[%c0_49, %c0_50], %780 {strides = array<i32>} : memref<2x8xf32, #tpu.memory_space<vmem>>, vector<2x8xf32>,
    return
  }
}

</mosaic_0001>

<bundles_post_ra>
// kernel: lstm_ae_forward.1
= control target key start
LH: loop header
LB: loop body
LE: loop exit
PB: predicated region body
PF: predicated region fallthrough
CT: control target
= control target key end

     0   :  { %9 = vsyncpa [#allocation3], 0  ;;  %s1811_s0 = inlined_call_operand.vmem [shape: f32[2,32], index: 0, kind: input, shape index: {}]   ;;  %s1812_s1 = inlined_call_operand.hbm [shape: f32[144,128], index: 1, kind: input, shape index: {}]   ;;  %s1813_s2 = inlined_call_operand.vmem [shape: f32[2,32], index: 2, kind: output, shape index: {0}]   ;;  %s1814_s3 = inlined_call_operand.hbm [shape: f32[2,8], index: 3, kind: output, shape index: {1}]  }
   0x1   :  { %10 = vsyncpa [#allocation4], 0  ;;  %s17_s14 = sshll.u32 %s1812_s1, 4  ;;  %s1389_s15 = smov [#allocation2]   ;;  %s18_s14 = int_to_ptr.hbm [resolvable:$true] %s17_s14 }
   0x2   :  { %s19_s16 = sshll.u32 %s1389_s15, 4  ;;  %s1390_s17 = smov 128   ;;  %s20_s16 = int_to_ptr.vmem [resolvable:$true] %s19_s16 }
   0x3   :  { %s1391_s18 = smov 8  }
   0x4   :  { %25 = dma.hbm_to_vmem [thread:$0]  %s18_s14, 2304, %s20_s16, [#allocation3], %s1390_s17, %s1390_s17, %s1391_s18  }
   0x5   :  { %1385 = dma.done.wait [#allocation3], 2304  }
   0x6   :  { %1386 = vsyncadd [#allocation3], 4294964992  ;;  %v33_v0 = vld [vmem:[#allocation2 + $0x18] sm:$0xff]  ;;  %v32_v1 = vld [vmem:[#allocation2 + $0x10] sm:$0xff]  ;;  %vm50_vm0 = vcmask 261120   ;;  %s1393_s1 = smov 4  }
   0x7   :  { %66 = vmatpush.msra.mxu0 %v33_v0  ;;  %v31_v2 = vld [vmem:[#allocation2 + $0x8] sm:$0xff]  ;;  %v30_v3 = vld [vmem:[#allocation2] sm:$0xff]  ;;  %v1394_v30 = vmov 11   ;;  %v1395_v31 = vmov 9   ;;  %v1396_v32 = vmov 8   ;;  %v1397_v35 = vmov 10  }
   0x8   :  { %v48_v4 = vld [vmem:[%s1811_s0] sm:$0x3]  ;;  %v35_v5 = vld [vmem:[#allocation2 + $0x28] sm:$0xf]  ;;  %s1392_s0 = smov 116   ;;  %1184 = vset.pattern.permute.xlu0 %v1394_v30  ;;  %1182 = vset.pattern.permute.xlu2 %v1395_v31  ;;  %s1398_s21 = smov 16  }
   0x9   :  { %67 = vmatpush.msra.mxu0 %v32_v1  ;;  %v1474_v6 = vperm.slane %v35_v5, 0  ;;  %v1476_v7 = vperm.slane %v35_v5, 1  ;;  %v1478_v8 = vperm.slane %v35_v5, 2  ;;  %v1480_v9 = vperm.slane %v35_v5, 3  ;;  %v1270_v16 = vld [vmem:[#allocation2 + $0x20] ss:$0 sm:$0xff]  ;;  %1181 = vset.pattern.permute.xlu1 %v1396_v32 }
   0xa   :  { %v1399_v59 = vmov 26   ;;  %v1400_v60 = vmov 25   ;;  %v1401_v61 = vmov 24   ;;  %v1402_v0 = vmov 27   ;;  %s1403_s22 = smov 32   ;;  %s1408_s23 = smov 48  }
   0xb   :  { %68 = vmatpush.msra.mxu0 %v31_v2  ;;  %v75_v10 = vmul.f32 0.0, %v1474_v6  ;;  %v77_v11 = vmul.f32 0.0, %v1476_v7  ;;  %v79_v12 = vmul.f32 0.0, %v1478_v8  ;;  %v81_v13 = vmul.f32 0.0, %v1480_v9  ;;  %s1413_s24 = smov 64   ;;  %s1418_s25 = smov 80  }
   0xc   :  { %v1405_v30 = vmov 40   ;;  %v1406_v31 = vmov 42   ;;  %s1423_s26 = smov 96   ;;  %s1428_s27 = smov 112   ;;  %vm1099_vm1 = vcmask 58368   ;;  %vm1056_vm2 = vcmask 64512  }
   0xd   :  { %69 = vmatpush.msra.mxu0 %v30_v3  ;;  %v82_v14 = vadd.f32 %v77_v11, %v75_v10  ;;  %v83_v15 = vadd.f32 %v81_v13, %v79_v12  ;;  %s1433_s28 = smov 104   ;;  %s1442_s29 = smov 120   ;;  %vm1058_vm3 = vcmask 130048   ;;  %vm1060_vm4 = vcmask 195584  }
   0xe   :  { %1122 = vmatmul.msk.f32.vlgmr.msra.gmra.mxu0 %vm50_vm0, %v48_v4  ;;  %s1443_s30 = smov 24   ;;  %s1444_s4 = smov 40   ;;  %vm1063_vm5 = vcmask 326656   ;;  %vm1065_vm6 = vcmask 392192   ;;  %vm1067_vm7 = vcmask 457728   ;;  %vm1070_vm8 = vcmask 523264  }
   0xf   :  { %v84_v17 = vadd.f32 %v83_v15, %v82_v14  ;;  %s1445_s5 = smov [#allocation5]   ;;  %s1110_s9 = sshll.u32 %s1814_s3, 4  ;;  %vm1094_vm9 = vcmask 254976   ;;  %s1111_s9 = int_to_ptr.hbm [resolvable:$true] %s1110_s9 }
  0x10   :  { %s1108_s6 = sshll.u32 %s1445_s5, 4  ;;  %s1109_s6 = int_to_ptr.vmem [resolvable:$true] %s1108_s6 }
  0x8b   :  { %v71_v18 = vpop.f32.mrf.mxu0 }
  0x8c   :  { %v1486_v19 = vadd.f32 %v1270_v16, %v71_v18 }
  0x8e   :  { %v85_v20 = vadd.f32 %v84_v17, %v1486_v19 }
  0x90   :  { %1273 = vtanh.f32 %v85_v20 }
  0x96   :  { %v1274_v21 = vpop.eup %1273 }
  0x97   :  { %91 = vrot.lane.b32.xlu0 %v1274_v21, %s1392_s0  ;;  %v87_v22 = vmul.f32 0.5, %v1274_v21 }
  0x99   :  { %v88_v23 = vadd.f32 0.5, %v87_v22 }
  0x9b   :  { %v89_v26 = vmul.f32 0.0, %v88_v23 }
 0x109   :  { %v92_v24 = vpop.permute.xlu0 %91 }
 0x10a   :  { %v94_v25 = vmul.f32 %v92_v24, %v88_v23 }
 0x10c   :  { %96 = vrot.lane.b32.xlu0 %v94_v25, %s1393_s1 }
 0x17e   :  { %v97_v27 = vpop.permute.xlu0 %96 }
 0x17f   :  { %v99_v28 = vadd.f32 %v97_v27, %v89_v26 }
 0x181   :  { %1275 = vtanh.f32 %v99_v28 }
 0x187   :  { %v1276_v29 = vpop.eup %1275 }
 0x188   :  { %102 = vrot.lane.b32.xlu1 %v1276_v29, %s1393_s1  ;;  %v1404_v29 = vmov 41  }
 0x1fa   :  { %v103_v33 = vpop.permute.xlu1 %102 }
 0x1fb   :  { %v105_v34 = vmul.f32 %v103_v33, %v88_v23 }
 0x1fd   :  { %123 = vperm.xlu0 %1184, %v105_v34   ;;  %113 = vperm.xlu2 %1182, %v105_v34  }
 0x1fe   :  { %108 = vperm.xlu1 %1181, %v105_v34  }
 0x205   :  { %1183 = vset.pattern.permute.xlu2 %v1397_v35  ;;  %1187 = vset.pattern.permute.xlu0 %v1399_v59  ;;  %v1410_v59 = vmov 56  }
 0x206   :  { %118 = vperm.xlu2 %1183, %v105_v34   ;;  %1185 = vset.pattern.permute.xlu1 %v1401_v61  ;;  %v1407_v34 = vmov 43  }
 0x20e   :  { %1186 = vset.pattern.permute.xlu2 %v1400_v60  ;;  %v1411_v60 = vmov 58  }
 0x257   :  { %v114_v36 = vpop.permute.xlu2 %113 }
 0x258   :  { %v116_v42 = vmul.f32 %v114_v36, %v1476_v7 }
 0x260   :  { %v119_v37 = vpop.permute.xlu2 %118 }
 0x261   :  { %v121_v39 = vmul.f32 %v119_v37, %v1478_v8 }
 0x26f   :  { %v124_v38 = vpop.permute.xlu0 %123 }
 0x270   :  { %v126_v40 = vmul.f32 %v124_v38, %v1480_v9  ;;  %v109_v41 = vpop.permute.xlu1 %108 }
 0x271   :  { %v111_v43 = vmul.f32 %v109_v41, %v1474_v6 }
 0x272   :  { %v128_v44 = vadd.f32 %v126_v40, %v121_v39 }
 0x273   :  { %v127_v45 = vadd.f32 %v116_v42, %v111_v43 }
 0x275   :  { %v129_v46 = vadd.f32 %v128_v44, %v127_v45 }
 0x277   :  { %131 = vrot.lane.b32.xlu1 %v129_v46, %s1398_s21 }
 0x27f   :  { %139 = vrot.lane.b32.xlu1 %v99_v28, %s1398_s21 }
 0x2e9   :  { %v132_v47 = vpop.permute.xlu1 %131 }
 0x2ea   :  { %v134_v48 = vadd.f32 %v132_v47, %v1486_v19 }
 0x2ec   :  { %1277 = vtanh.f32 %v134_v48 }
 0x2f1   :  { %v140_v54 = vpop.permute.xlu1 %139 }
 0x2f2   :  { %v1278_v49 = vpop.eup %1277 }
 0x2f3   :  { %144 = vrot.lane.b32.xlu2 %v1278_v49, %s1392_s0  ;;  %v136_v50 = vmul.f32 0.5, %v1278_v49 }
 0x2f5   :  { %v137_v51 = vadd.f32 0.5, %v136_v50 }
 0x2f7   :  { %v142_v55 = vmul.f32 %v140_v54, %v137_v51 }
 0x34d   :  { %v145_v52 = vpop.permute.xlu2 %144 }
 0x34e   :  { %v147_v53 = vmul.f32 %v145_v52, %v137_v51 }
 0x350   :  { %149 = vrot.lane.b32.xlu2 %v147_v53, %s1393_s1 }
 0x3aa   :  { %v150_v56 = vpop.permute.xlu2 %149 }
 0x3ab   :  { %v152_v57 = vadd.f32 %v150_v56, %v142_v55 }
 0x3ad   :  { %1279 = vtanh.f32 %v152_v57 }
 0x3b3   :  { %v1280_v58 = vpop.eup %1279 }
 0x3b4   :  { %155 = vrot.lane.b32.xlu0 %v1280_v58, %s1393_s1  ;;  %v1409_v58 = vmov 57  }
 0x426   :  { %v156_v62 = vpop.permute.xlu0 %155 }
 0x427   :  { %v158_v63 = vmul.f32 %v156_v62, %v137_v51 }
 0x429   :  { %171 = vperm.xlu0 %1187, %v158_v63   ;;  %166 = vperm.xlu2 %1186, %v158_v63  }
 0x42a   :  { %161 = vperm.xlu1 %1185, %v158_v63  }
 0x431   :  { %1190 = vset.pattern.permute.xlu0 %v1404_v29  ;;  %1189 = vset.pattern.permute.xlu2 %v1405_v30  ;;  %v1415_v29 = vmov 72   ;;  %v1416_v30 = vmov 74  }
 0x432   :  { %1188 = vset.pattern.permute.xlu1 %v1402_v0 }
 0x433   :  { %176 = vperm.xlu1 %1188, %v158_v63   ;;  %v1412_v63 = vmov 59  }
 0x43b   :  { %1191 = vset.pattern.permute.xlu1 %v1406_v31 }
 0x483   :  { %v167_v2 = vpop.permute.xlu2 %166 }
 0x484   :  { %v169_v10 = vmul.f32 %v167_v2, %v1476_v7 }
 0x49b   :  { %v172_v3 = vpop.permute.xlu0 %171 }
 0x49c   :  { %v162_v1 = vpop.permute.xlu1 %161  ;;  %v174_v11 = vmul.f32 %v172_v3, %v1478_v8 }
 0x49d   :  { %v164_v4 = vmul.f32 %v162_v1, %v1474_v6 }
 0x49f   :  { %v180_v13 = vadd.f32 %v169_v10, %v164_v4 }
 0x4a5   :  { %v177_v5 = vpop.permute.xlu1 %176 }
 0x4a6   :  { %v179_v12 = vmul.f32 %v177_v5, %v1480_v9 }
 0x4a8   :  { %v181_v14 = vadd.f32 %v179_v12, %v174_v11 }
 0x4aa   :  { %v182_v15 = vadd.f32 %v181_v14, %v180_v13 }
 0x4ac   :  { %184 = vrot.lane.b32.xlu2 %v182_v15, %s1403_s22 }
 0x4b4   :  { %192 = vrot.lane.b32.xlu2 %v152_v57, %s1398_s21 }
 0x506   :  { %v185_v16 = vpop.permute.xlu2 %184 }
 0x507   :  { %v187_v17 = vadd.f32 %v185_v16, %v1486_v19 }
 0x509   :  { %1281 = vtanh.f32 %v187_v17 }
 0x50e   :  { %v193_v24 = vpop.permute.xlu2 %192 }
 0x50f   :  { %v1282_v18 = vpop.eup %1281 }
 0x510   :  { %197 = vrot.lane.b32.xlu1 %v1282_v18, %s1392_s0  ;;  %v189_v20 = vmul.f32 0.5, %v1282_v18 }
 0x512   :  { %v190_v21 = vadd.f32 0.5, %v189_v20 }
 0x514   :  { %v195_v25 = vmul.f32 %v193_v24, %v190_v21 }
 0x582   :  { %v198_v22 = vpop.permute.xlu1 %197 }
 0x583   :  { %v200_v23 = vmul.f32 %v198_v22, %v190_v21 }
 0x585   :  { %202 = vrot.lane.b32.xlu0 %v200_v23, %s1393_s1 }
 0x5f7   :  { %v203_v26 = vpop.permute.xlu0 %202 }
 0x5f8   :  { %v205_v27 = vadd.f32 %v203_v26, %v195_v25 }
 0x5fa   :  { %1283 = vtanh.f32 %v205_v27 }
 0x600   :  { %v1284_v28 = vpop.eup %1283 }
 0x601   :  { %208 = vrot.lane.b32.xlu1 %v1284_v28, %s1393_s1  ;;  %v1414_v28 = vmov 73  }
 0x673   :  { %v209_v32 = vpop.permute.xlu1 %208 }
 0x674   :  { %v211_v33 = vmul.f32 %v209_v32, %v190_v21 }
 0x676   :  { %224 = vperm.xlu1 %1191, %v211_v33   ;;  %219 = vperm.xlu0 %1190, %v211_v33  }
 0x677   :  { %214 = vperm.xlu2 %1189, %v211_v33  }
 0x67e   :  { %245 = vrot.lane.b32.xlu0 %v205_v27, %s1398_s21  ;;  %1194 = vset.pattern.permute.xlu1 %v1409_v58  ;;  %v1420_v58 = vmov 88  }
 0x67f   :  { %1192 = vset.pattern.permute.xlu2 %v1407_v34  ;;  %1193 = vset.pattern.permute.xlu0 %v1410_v59  ;;  %v1421_v59 = vmov 90  }
 0x680   :  { %229 = vperm.xlu2 %1192, %v211_v33   ;;  %v1417_v33 = vmov 75  }
 0x688   :  { %1195 = vset.pattern.permute.xlu2 %v1411_v60 }
 0x6d1   :  { %v215_v35 = vpop.permute.xlu2 %214 }
 0x6d2   :  { %v217_v39 = vmul.f32 %v215_v35, %v1474_v6 }
 0x6da   :  { %v230_v36 = vpop.permute.xlu2 %229 }
 0x6db   :  { %v232_v40 = vmul.f32 %v230_v36, %v1480_v9 }
 0x6e8   :  { %v225_v37 = vpop.permute.xlu1 %224  ;;  %v220_v38 = vpop.permute.xlu0 %219 }
 0x6e9   :  { %v227_v41 = vmul.f32 %v225_v37, %v1478_v8  ;;  %v222_v42 = vmul.f32 %v220_v38, %v1476_v7 }
 0x6eb   :  { %v234_v43 = vadd.f32 %v232_v40, %v227_v41  ;;  %v233_v44 = vadd.f32 %v222_v42, %v217_v39 }
 0x6ed   :  { %v235_v45 = vadd.f32 %v234_v43, %v233_v44 }
 0x6ef   :  { %237 = vrot.lane.b32.xlu1 %v235_v45, %s1408_s23 }
 0x6f0   :  { %v246_v53 = vpop.permute.xlu0 %245 }
 0x761   :  { %v238_v46 = vpop.permute.xlu1 %237 }
 0x762   :  { %v240_v47 = vadd.f32 %v238_v46, %v1486_v19 }
 0x764   :  { %1285 = vtanh.f32 %v240_v47 }
 0x76a   :  { %v1286_v48 = vpop.eup %1285 }
 0x76b   :  { %250 = vrot.lane.b32.xlu2 %v1286_v48, %s1392_s0  ;;  %v242_v49 = vmul.f32 0.5, %v1286_v48 }
 0x76d   :  { %v243_v50 = vadd.f32 0.5, %v242_v49 }
 0x76f   :  { %v248_v54 = vmul.f32 %v246_v53, %v243_v50 }
 0x7c5   :  { %v251_v51 = vpop.permute.xlu2 %250 }
 0x7c6   :  { %v253_v52 = vmul.f32 %v251_v51, %v243_v50 }
 0x7c8   :  { %255 = vrot.lane.b32.xlu1 %v253_v52, %s1393_s1 }
 0x83a   :  { %v256_v55 = vpop.permute.xlu1 %255 }
 0x83b   :  { %v258_v56 = vadd.f32 %v256_v55, %v248_v54 }
 0x83d   :  { %1287 = vtanh.f32 %v258_v56 }
 0x843   :  { %v1288_v57 = vpop.eup %1287 }
 0x844   :  { %261 = vrot.lane.b32.xlu2 %v1288_v57, %s1393_s1  ;;  %v1419_v57 = vmov 89  }
 0x89e   :  { %v262_v61 = vpop.permute.xlu2 %261 }
 0x89f   :  { %v264_v62 = vmul.f32 %v262_v61, %v243_v50 }
 0x8a1   :  { %277 = vperm.xlu2 %1195, %v264_v62   ;;  %272 = vperm.xlu1 %1194, %v264_v62  }
 0x8a2   :  { %267 = vperm.xlu0 %1193, %v264_v62  }
 0x8a9   :  { %1196 = vset.pattern.permute.xlu1 %v1412_v63  ;;  %1198 = vset.pattern.permute.xlu2 %v1414_v28  ;;  %v1425_v28 = vmov 104  }
 0x8aa   :  { %282 = vperm.xlu1 %1196, %v264_v62   ;;  %1199 = vset.pattern.permute.xlu0 %v1416_v30  ;;  %v1422_v62 = vmov 91  }
 0x8b2   :  { %298 = vrot.lane.b32.xlu1 %v258_v56, %s1398_s21 }
 0x8b3   :  { %1197 = vset.pattern.permute.xlu1 %v1415_v29  ;;  %v1426_v29 = vmov 106  }
 0x8fb   :  { %v278_v2 = vpop.permute.xlu2 %277 }
 0x8fc   :  { %v280_v10 = vmul.f32 %v278_v2, %v1478_v8 }
 0x913   :  { %v273_v0 = vpop.permute.xlu1 %272 }
 0x914   :  { %v268_v1 = vpop.permute.xlu0 %267  ;;  %v275_v3 = vmul.f32 %v273_v0, %v1476_v7 }
 0x915   :  { %v270_v4 = vmul.f32 %v268_v1, %v1474_v6 }
 0x917   :  { %v286_v12 = vadd.f32 %v275_v3, %v270_v4 }
 0x91c   :  { %v283_v5 = vpop.permute.xlu1 %282 }
 0x91d   :  { %v285_v11 = vmul.f32 %v283_v5, %v1480_v9 }
 0x91f   :  { %v287_v13 = vadd.f32 %v285_v11, %v280_v10 }
 0x921   :  { %v288_v14 = vadd.f32 %v287_v13, %v286_v12 }
 0x923   :  { %290 = vrot.lane.b32.xlu2 %v288_v14, %s1413_s24 }
 0x924   :  { %v299_v23 = vpop.permute.xlu1 %298 }
 0x97d   :  { %v291_v15 = vpop.permute.xlu2 %290 }
 0x97e   :  { %v293_v16 = vadd.f32 %v291_v15, %v1486_v19 }
 0x980   :  { %1289 = vtanh.f32 %v293_v16 }
 0x986   :  { %v1290_v17 = vpop.eup %1289 }
 0x987   :  { %303 = vrot.lane.b32.xlu0 %v1290_v17, %s1392_s0  ;;  %v295_v18 = vmul.f32 0.5, %v1290_v17 }
 0x989   :  { %v296_v20 = vadd.f32 0.5, %v295_v18 }
 0x98b   :  { %v301_v24 = vmul.f32 %v299_v23, %v296_v20 }
 0x9f9   :  { %v304_v21 = vpop.permute.xlu0 %303 }
 0x9fa   :  { %v306_v22 = vmul.f32 %v304_v21, %v296_v20 }
 0x9fc   :  { %308 = vrot.lane.b32.xlu2 %v306_v22, %s1393_s1 }
 0xa56   :  { %v309_v25 = vpop.permute.xlu2 %308 }
 0xa57   :  { %v311_v26 = vadd.f32 %v309_v25, %v301_v24 }
 0xa59   :  { %1291 = vtanh.f32 %v311_v26 }
 0xa5f   :  { %v1292_v27 = vpop.eup %1291 }
 0xa60   :  { %314 = vrot.lane.b32.xlu0 %v1292_v27, %s1393_s1  ;;  %v1424_v27 = vmov 105  }
 0xad2   :  { %v315_v31 = vpop.permute.xlu0 %314 }
 0xad3   :  { %v317_v32 = vmul.f32 %v315_v31, %v296_v20 }
 0xad5   :  { %330 = vperm.xlu0 %1199, %v317_v32   ;;  %325 = vperm.xlu2 %1198, %v317_v32  }
 0xad6   :  { %320 = vperm.xlu1 %1197, %v317_v32  }
 0xadd   :  { %1202 = vset.pattern.permute.xlu0 %v1419_v57  ;;  %1201 = vset.pattern.permute.xlu2 %v1420_v58  ;;  %v37_v57 = vld [vmem:[#allocation2 + $0x38] sm:$0xff] }
 0xade   :  { %1200 = vset.pattern.permute.xlu1 %v1417_v33  ;;  %v1558_v58 = vperm.slane %v37_v57, 0 }
 0xadf   :  { %335 = vperm.xlu1 %1200, %v317_v32   ;;  %v1427_v32 = vmov 107  }
 0xae7   :  { %1203 = vset.pattern.permute.xlu1 %v1421_v59  ;;  %v1560_v59 = vperm.slane %v37_v57, 1 }
 0xb2f   :  { %v326_v35 = vpop.permute.xlu2 %325 }
 0xb30   :  { %v328_v39 = vmul.f32 %v326_v35, %v1476_v7 }
 0xb47   :  { %v331_v36 = vpop.permute.xlu0 %330 }
 0xb48   :  { %v321_v34 = vpop.permute.xlu1 %320  ;;  %v333_v40 = vmul.f32 %v331_v36, %v1478_v8 }
 0xb49   :  { %v323_v37 = vmul.f32 %v321_v34, %v1474_v6 }
 0xb4b   :  { %v339_v42 = vadd.f32 %v328_v39, %v323_v37 }
 0xb51   :  { %v336_v38 = vpop.permute.xlu1 %335 }
 0xb52   :  { %v338_v41 = vmul.f32 %v336_v38, %v1480_v9 }
 0xb54   :  { %v340_v43 = vadd.f32 %v338_v41, %v333_v40 }
 0xb56   :  { %v341_v44 = vadd.f32 %v340_v43, %v339_v42 }
 0xb58   :  { %343 = vrot.lane.b32.xlu2 %v341_v44, %s1418_s25 }
 0xb60   :  { %351 = vrot.lane.b32.xlu2 %v311_v26, %s1398_s21 }
 0xbb2   :  { %v344_v45 = vpop.permute.xlu2 %343 }
 0xbb3   :  { %v346_v46 = vadd.f32 %v344_v45, %v1486_v19 }
 0xbb5   :  { %1293 = vtanh.f32 %v346_v46 }
 0xbba   :  { %v352_v52 = vpop.permute.xlu2 %351 }
 0xbbb   :  { %v1294_v47 = vpop.eup %1293 }
 0xbbc   :  { %356 = vrot.lane.b32.xlu1 %v1294_v47, %s1392_s0  ;;  %v348_v48 = vmul.f32 0.5, %v1294_v47 }
 0xbbe   :  { %v349_v49 = vadd.f32 0.5, %v348_v48 }
 0xbc0   :  { %v354_v53 = vmul.f32 %v352_v52, %v349_v49  ;;  %v1429_v52 = vmov 121  }
 0xc2e   :  { %v357_v50 = vpop.permute.xlu1 %356 }
 0xc2f   :  { %v359_v51 = vmul.f32 %v357_v50, %v349_v49 }
 0xc31   :  { %361 = vrot.lane.b32.xlu0 %v359_v51, %s1393_s1 }
 0xca3   :  { %v362_v54 = vpop.permute.xlu0 %361 }
 0xca4   :  { %v364_v55 = vadd.f32 %v362_v54, %v354_v53  ;;  %v1431_v53 = vmov 122  }
 0xca6   :  { %1295 = vtanh.f32 %v364_v55 }
 0xcac   :  { %v1296_v56 = vpop.eup %1295 }
 0xcad   :  { %367 = vrot.lane.b32.xlu1 %v1296_v56, %s1393_s1  ;;  %v1432_v56 = vmov 123  }
 0xd1f   :  { %v368_v60 = vpop.permute.xlu1 %367 }
 0xd20   :  { %v370_v61 = vmul.f32 %v368_v60, %v349_v49  ;;  %v1562_v60 = vperm.slane %v37_v57, 2 }
 0xd22   :  { %383 = vperm.xlu1 %1203, %v370_v61   ;;  %378 = vperm.xlu0 %1202, %v370_v61  }
 0xd23   :  { %373 = vperm.xlu2 %1201, %v370_v61  }
 0xd2a   :  { %404 = vrot.lane.b32.xlu0 %v364_v55, %s1398_s21  ;;  %1206 = vset.pattern.permute.xlu1 %v1424_v27 }
 0xd2b   :  { %1204 = vset.pattern.permute.xlu2 %v1422_v62  ;;  %1205 = vset.pattern.permute.xlu0 %v1425_v28  ;;  %v1566_v62 = vperm.slane %v37_v57, 4 }
 0xd2c   :  { %388 = vperm.xlu2 %1204, %v370_v61   ;;  %v1564_v61 = vperm.slane %v37_v57, 3 }
 0xd34   :  { %1207 = vset.pattern.permute.xlu2 %v1426_v29 }
 0xd7d   :  { %v374_v63 = vpop.permute.xlu2 %373 }
 0xd7e   :  { %v376_v3 = vmul.f32 %v374_v63, %v1474_v6  ;;  %v1568_v63 = vperm.slane %v37_v57, 5 }
 0xd86   :  { %v389_v0 = vpop.permute.xlu2 %388 }
 0xd87   :  { %v391_v4 = vmul.f32 %v389_v0, %v1480_v9  ;;  %v1570_v0 = vperm.slane %v37_v57, 6 }
 0xd94   :  { %v384_v1 = vpop.permute.xlu1 %383  ;;  %v379_v2 = vpop.permute.xlu0 %378 }
 0xd95   :  { %v386_v5 = vmul.f32 %v384_v1, %v1478_v8  ;;  %v381_v10 = vmul.f32 %v379_v2, %v1476_v7  ;;  %v1572_v1 = vperm.slane %v37_v57, 7 }
 0xd97   :  { %v393_v11 = vadd.f32 %v391_v4, %v386_v5  ;;  %v392_v12 = vadd.f32 %v381_v10, %v376_v3  ;;  %v508_v3 = vmul.f32 0.0, %v1558_v58  ;;  %v510_v4 = vmul.f32 0.0, %v1560_v59 }
 0xd98   :  { %v512_v5 = vmul.f32 0.0, %v1562_v60  ;;  %v514_v10 = vmul.f32 0.0, %v1564_v61 }
 0xd99   :  { %v394_v13 = vadd.f32 %v393_v11, %v392_v12  ;;  %v36_v11 = vld [vmem:[#allocation2 + $0x30] sm:$0xf]  ;;  %v516_v12 = vmul.f32 0.0, %v1566_v62 }
 0xd9b   :  { %396 = vrot.lane.b32.xlu1 %v394_v13, %s1423_s26  ;;  %v518_v13 = vmul.f32 0.0, %v1568_v63 }
 0xd9c   :  { %v405_v22 = vpop.permute.xlu0 %404 }
 0xe0d   :  { %v397_v14 = vpop.permute.xlu1 %396 }
 0xe0e   :  { %v399_v15 = vadd.f32 %v397_v14, %v1486_v19  ;;  %v520_v14 = vmul.f32 0.0, %v1570_v0 }
 0xe10   :  { %1297 = vtanh.f32 %v399_v15  ;;  %v522_v15 = vmul.f32 0.0, %v1572_v1 }
 0xe16   :  { %v1298_v16 = vpop.eup %1297 }
 0xe17   :  { %409 = vrot.lane.b32.xlu2 %v1298_v16, %s1392_s0  ;;  %v401_v17 = vmul.f32 0.5, %v1298_v16  ;;  %v482_v16 = vperm.slane %v36_v11, 0 }
 0xe19   :  { %v402_v18 = vadd.f32 0.5, %v401_v17  ;;  %v488_v17 = vperm.slane %v36_v11, 1 }
 0xe1b   :  { %v407_v23 = vmul.f32 %v405_v22, %v402_v18  ;;  %v523_v22 = vadd.f32 %v510_v4, %v508_v3 }
 0xe71   :  { %v410_v20 = vpop.permute.xlu2 %409 }
 0xe72   :  { %v412_v21 = vmul.f32 %v410_v20, %v402_v18  ;;  %v500_v20 = vperm.slane %v36_v11, 3 }
 0xe74   :  { %414 = vrot.lane.b32.xlu1 %v412_v21, %s1393_s1 }
 0xee6   :  { %v415_v24 = vpop.permute.xlu1 %414 }
 0xee7   :  { %v417_v25 = vadd.f32 %v415_v24, %v407_v23  ;;  %v524_v23 = vadd.f32 %v514_v10, %v512_v5  ;;  %v525_v24 = vadd.f32 %v518_v13, %v516_v12 }
 0xee9   :  { %1299 = vtanh.f32 %v417_v25 }
 0xeef   :  { %v1300_v26 = vpop.eup %1299 }
 0xef0   :  { %420 = vrot.lane.b32.xlu2 %v1300_v26, %s1393_s1 }
 0xf4a   :  { %v421_v30 = vpop.permute.xlu2 %420 }
 0xf4b   :  { %v423_v31 = vmul.f32 %v421_v30, %v402_v18  ;;  %v494_v18 = vperm.slane %v36_v11, 2 }
 0xf4d   :  { %436 = vperm.xlu2 %1207, %v423_v31   ;;  %431 = vperm.xlu1 %1206, %v423_v31  }
 0xf4e   :  { %426 = vperm.xlu0 %1205, %v423_v31  }
 0xf55   :  { %1208 = vset.pattern.permute.xlu1 %v1427_v32  ;;  %1210 = vset.pattern.permute.xlu2 %v1429_v52  ;;  %v527_v32 = vadd.f32 %v524_v23, %v523_v22  ;;  %v1438_v52 = vmov 19  }
 0xf56   :  { %441 = vperm.xlu1 %1208, %v423_v31   ;;  %1211 = vset.pattern.permute.xlu0 %v1431_v53  ;;  %v1440_v53 = vmov 23  }
 0xf5e   :  { %457 = vrot.lane.b32.xlu1 %v417_v25, %s1398_s21  ;;  %v526_v25 = vadd.f32 %v522_v15, %v520_v14 }
 0xfa7   :  { %v437_v35 = vpop.permute.xlu2 %436 }
 0xfa8   :  { %v439_v39 = vmul.f32 %v437_v35, %v1478_v8  ;;  %v1271_v35 = vld [vmem:[#allocation2 + $0x40] ss:$0 sm:$0xff] }
 0xfbf   :  { %v432_v33 = vpop.permute.xlu1 %431 }
 0xfc0   :  { %v427_v34 = vpop.permute.xlu0 %426  ;;  %v434_v36 = vmul.f32 %v432_v33, %v1476_v7  ;;  %v528_v33 = vadd.f32 %v526_v25, %v525_v24 }
 0xfc1   :  { %v429_v37 = vmul.f32 %v427_v34, %v1474_v6 }
 0xfc3   :  { %v445_v41 = vadd.f32 %v434_v36, %v429_v37 }
 0xfc8   :  { %v442_v38 = vpop.permute.xlu1 %441 }
 0xfc9   :  { %v444_v40 = vmul.f32 %v442_v38, %v1480_v9  ;;  %v529_v38 = vadd.f32 %v528_v33, %v527_v32 }
 0xfcb   :  { %v446_v42 = vadd.f32 %v444_v40, %v439_v39 }
 0xfcd   :  { %v447_v43 = vadd.f32 %v446_v42, %v445_v41 }
 0xfcf   :  { %449 = vrot.lane.b32.xlu2 %v447_v43, %s1428_s27 }
 0xfd0   :  { %v458_v8 = vpop.permute.xlu1 %457 }
0x1029   :  { %v450_v44 = vpop.permute.xlu2 %449 }
0x102a   :  { %v452_v45 = vadd.f32 %v450_v44, %v1486_v19  ;;  %v1430_v19 = vmov 120  }
0x102b   :  { %1209 = vset.pattern.permute.xlu1 %v1430_v19  ;;  %v1439_v19 = vmov 21  }
0x102c   :  { %1301 = vtanh.f32 %v452_v45 }
0x1032   :  { %v1302_v46 = vpop.eup %1301 }
0x1033   :  { %462 = vrot.lane.b32.xlu0 %v1302_v46, %s1392_s0  ;;  %v454_v7 = vmul.f32 0.5, %v1302_v46 }
0x1035   :  { %v455_v6 = vadd.f32 0.5, %v454_v7 }
0x1037   :  { %v460_v9 = vmul.f32 %v458_v8, %v455_v6  ;;  %v1435_v8 = vmov 18  }
0x10a5   :  { %v463_v47 = vpop.permute.xlu0 %462 }
0x10a6   :  { %v465_v48 = vmul.f32 %v463_v47, %v455_v6 }
0x10a8   :  { %467 = vrot.lane.b32.xlu2 %v465_v48, %s1393_s1  ;;  %v1434_v48 = vmov 16  }
0x1102   :  { %v468_v49 = vpop.permute.xlu2 %467 }
0x1103   :  { %v470_v50 = vadd.f32 %v468_v49, %v460_v9  ;;  %v1436_v9 = vmov 17  }
0x1105   :  { %1303 = vtanh.f32 %v470_v50 }
0x110b   :  { %v1304_v51 = vpop.eup %1303 }
0x110c   :  { %473 = vrot.lane.b32.xlu0 %v1304_v51, %s1393_s1  ;;  %v1437_v51 = vmov 20  }
0x117e   :  { %v474_v54 = vpop.permute.xlu0 %473 }
0x117f   :  { %v476_v55 = vmul.f32 %v474_v54, %v455_v6  ;;  %v1441_v54 = vmov 22  }
0x1181   :  { %491 = vperm.xlu0 %1211, %v476_v55   ;;  %485 = vperm.xlu2 %1210, %v476_v55  }
0x1182   :  { %479 = vperm.xlu1 %1209, %v476_v55  }
0x1189   :  { %1213 = vset.pattern.permute.xlu0 %v1434_v48  ;;  %1215 = vset.pattern.permute.xlu2 %v1435_v8 }
0x118a   :  { %1212 = vset.pattern.permute.xlu1 %v1432_v56 }
0x118b   :  { %497 = vperm.xlu1 %1212, %v476_v55  }
0x1193   :  { %1214 = vset.pattern.permute.xlu1 %v1436_v9 }
0x11db   :  { %v486_v21 = vpop.permute.xlu2 %485 }
0x11dc   :  { %v489_v28 = vmul.f32 %v488_v17, %v486_v21 }
0x11f3   :  { %v492_v26 = vpop.permute.xlu0 %491 }
0x11f4   :  { %v480_v2 = vpop.permute.xlu1 %479  ;;  %v495_v30 = vmul.f32 %v494_v18, %v492_v26 }
0x11f5   :  { %v483_v27 = vmul.f32 %v482_v16, %v480_v2 }
0x11f7   :  { %v502_v34 = vadd.f32 %v489_v28, %v483_v27 }
0x11fd   :  { %v498_v29 = vpop.permute.xlu1 %497 }
0x11fe   :  { %v501_v31 = vmul.f32 %v500_v20, %v498_v29 }
0x1200   :  { %v503_v36 = vadd.f32 %v501_v31, %v495_v30 }
0x1202   :  { %v504_v37 = vadd.f32 %v503_v36, %v502_v34 }
0x1204   :  { %v1582_v39 = vadd.f32 %v1271_v35, %v504_v37 }
0x1206   :  { %v530_v40 = vadd.f32 %v529_v38, %v1582_v39 }
0x1208   :  { %1305 = vtanh.f32 %v530_v40 }
0x120e   :  { %v1306_v41 = vpop.eup %1305 }
0x120f   :  { %536 = vrot.lane.b32.xlu2 %v1306_v41, %s1433_s28  ;;  %v532_v42 = vmul.f32 0.5, %v1306_v41 }
0x1211   :  { %v533_v43 = vadd.f32 0.5, %v532_v42 }
0x1213   :  { %v534_v46 = vmul.f32 0.0, %v533_v43 }
0x1269   :  { %v537_v44 = vpop.permute.xlu2 %536 }
0x126a   :  { %v539_v45 = vmul.f32 %v537_v44, %v533_v43 }
0x126c   :  { %541 = vrot.lane.b32.xlu1 %v539_v45, %s1391_s18 }
0x12de   :  { %v542_v7 = vpop.permute.xlu1 %541 }
0x12df   :  { %v1587_v6 = vadd.f32 %v542_v7, %v534_v46 }
0x12e1   :  { %1307 = vtanh.f32 %v1587_v6 }
0x12e7   :  { %v1308_v47 = vpop.eup %1307 }
0x12e8   :  { %547 = vrot.lane.b32.xlu2 %v1308_v47, %s1391_s18 }
0x1342   :  { %v548_v49 = vpop.permute.xlu2 %547 }
0x1343   :  { %v1594_v50 = vmul.f32 %v548_v49, %v533_v43 }
0x1345   :  { %563 = vperm.xlu2 %1215, %v1594_v50   ;;  %558 = vperm.xlu1 %1214, %v1594_v50  }
0x1346   :  { %553 = vperm.xlu0 %1213, %v1594_v50  }
0x134d   :  { %1217 = vset.pattern.permute.xlu2 %v1437_v51  ;;  %1216 = vset.pattern.permute.xlu1 %v1438_v52 }
0x134e   :  { %1218 = vset.pattern.permute.xlu0 %v1439_v19  ;;  %573 = vperm.xlu2 %1217, %v1594_v50  }
0x134f   :  { %568 = vperm.xlu1 %1216, %v1594_v50   ;;  %578 = vperm.xlu0 %1218, %v1594_v50  }
0x1356   :  { %1220 = vset.pattern.permute.xlu2 %v1440_v53 }
0x1357   :  { %1219 = vset.pattern.permute.xlu1 %v1441_v54  ;;  %588 = vperm.xlu2 %1220, %v1594_v50  }
0x1358   :  { %583 = vperm.xlu1 %1219, %v1594_v50   ;;  %1223 = vset.pattern.permute.xlu0 %v1435_v8 }
0x135f   :  { %1222 = vset.pattern.permute.xlu2 %v1436_v9 }
0x1360   :  { %1221 = vset.pattern.permute.xlu1 %v1434_v48 }
0x139f   :  { %v564_v55 = vpop.permute.xlu2 %563 }
0x13a0   :  { %v566_v11 = vmul.f32 %v564_v55, %v1562_v60 }
0x13a8   :  { %v574_v2 = vpop.permute.xlu2 %573 }
0x13a9   :  { %v576_v16 = vmul.f32 %v574_v2, %v1566_v62 }
0x13b1   :  { %v589_v10 = vpop.permute.xlu2 %588 }
0x13b2   :  { %v591_v17 = vmul.f32 %v589_v10, %v1572_v1 }
0x13b7   :  { %v559_v56 = vpop.permute.xlu1 %558 }
0x13b8   :  { %v554_v57 = vpop.permute.xlu0 %553  ;;  %v561_v12 = vmul.f32 %v559_v56, %v1560_v59 }
0x13b9   :  { %v556_v13 = vmul.f32 %v554_v57, %v1558_v58 }
0x13bb   :  { %v592_v21 = vadd.f32 %v561_v12, %v556_v13 }
0x13c1   :  { %v569_v3 = vpop.permute.xlu1 %568  ;;  %v579_v4 = vpop.permute.xlu0 %578 }
0x13c2   :  { %v571_v5 = vmul.f32 %v569_v3, %v1564_v61  ;;  %v581_v14 = vmul.f32 %v579_v4, %v1568_v63 }
0x13c4   :  { %v593_v18 = vadd.f32 %v571_v5, %v566_v11  ;;  %v594_v22 = vadd.f32 %v581_v14, %v576_v16 }
0x13c6   :  { %v596_v24 = vadd.f32 %v593_v18, %v592_v21 }
0x13ca   :  { %v584_v15 = vpop.permute.xlu1 %583 }
0x13cb   :  { %v586_v20 = vmul.f32 %v584_v15, %v1570_v0 }
0x13cd   :  { %v595_v23 = vadd.f32 %v591_v17, %v586_v20 }
0x13cf   :  { %v597_v25 = vadd.f32 %v595_v23, %v594_v22 }
0x13d1   :  { %v598_v26 = vadd.f32 %v597_v25, %v596_v24 }
0x13d3   :  { %v599_v27 = vadd.f32 %v598_v26, %v1582_v39 }
0x13d5   :  { %1309 = vtanh.f32 %v599_v27 }
0x13db   :  { %v1310_v28 = vpop.eup %1309 }
0x13dc   :  { %605 = vrot.lane.b32.xlu1 %v1310_v28, %s1433_s28  ;;  %v601_v29 = vmul.f32 0.5, %v1310_v28 }
0x13de   :  { %v602_v30 = vadd.f32 0.5, %v601_v29 }
0x13e0   :  { %v603_v33 = vmul.f32 %v602_v30, %v1587_v6 }
0x144e   :  { %v606_v31 = vpop.permute.xlu1 %605 }
0x144f   :  { %v608_v32 = vmul.f32 %v606_v31, %v602_v30 }
0x1451   :  { %610 = vrot.lane.b32.xlu2 %v608_v32, %s1391_s18 }
0x14ab   :  { %v611_v34 = vpop.permute.xlu2 %610 }
0x14ac   :  { %v613_v35 = vadd.f32 %v611_v34, %v603_v33 }
0x14ae   :  { %1311 = vtanh.f32 %v613_v35 }
0x14b4   :  { %v1312_v36 = vpop.eup %1311 }
0x14b5   :  { %616 = vrot.lane.b32.xlu0 %v1312_v36, %s1391_s18 }
0x1527   :  { %v617_v37 = vpop.permute.xlu0 %616 }
0x1528   :  { %v1625_v38 = vmul.f32 %v617_v37, %v602_v30 }
0x152a   :  { %632 = vperm.xlu0 %1223, %v1625_v38   ;;  %627 = vperm.xlu2 %1222, %v1625_v38  }
0x152b   :  { %622 = vperm.xlu1 %1221, %v1625_v38  }
0x1532   :  { %1228 = vset.pattern.permute.xlu0 %v1440_v53  ;;  %1225 = vset.pattern.permute.xlu2 %v1437_v51 }
0x1533   :  { %1224 = vset.pattern.permute.xlu1 %v1438_v52  ;;  %657 = vperm.xlu0 %1228, %v1625_v38  }
0x1534   :  { %642 = vperm.xlu2 %1225, %v1625_v38   ;;  %637 = vperm.xlu1 %1224, %v1625_v38  }
0x153b   :  { %1230 = vset.pattern.permute.xlu0 %v1436_v9 }
0x153c   :  { %1227 = vset.pattern.permute.xlu2 %v1441_v54  ;;  %1226 = vset.pattern.permute.xlu1 %v1439_v19 }
0x153d   :  { %652 = vperm.xlu2 %1227, %v1625_v38   ;;  %647 = vperm.xlu1 %1226, %v1625_v38  }
0x1545   :  { %1229 = vset.pattern.permute.xlu2 %v1434_v48  ;;  %1231 = vset.pattern.permute.xlu1 %v1435_v8 }
0x1584   :  { %v628_v40 = vpop.permute.xlu2 %627 }
0x1585   :  { %v630_v55 = vmul.f32 %v628_v40, %v1560_v59 }
0x158e   :  { %v643_v43 = vpop.permute.xlu2 %642 }
0x158f   :  { %v645_v57 = vmul.f32 %v643_v43, %v1566_v62 }
0x1597   :  { %v653_v7 = vpop.permute.xlu2 %652 }
0x1598   :  { %v655_v2 = vmul.f32 %v653_v7, %v1570_v0 }
0x159c   :  { %v633_v42 = vpop.permute.xlu0 %632 }
0x159d   :  { %v623_v41 = vpop.permute.xlu1 %622  ;;  %v635_v6 = vmul.f32 %v633_v42, %v1562_v60 }
0x159e   :  { %v625_v47 = vmul.f32 %v623_v41, %v1558_v58 }
0x15a0   :  { %v661_v5 = vadd.f32 %v630_v55, %v625_v47 }
0x15a5   :  { %v658_v45 = vpop.permute.xlu0 %657 }
0x15a6   :  { %v638_v44 = vpop.permute.xlu1 %637  ;;  %v660_v49 = vmul.f32 %v658_v45, %v1572_v1 }
0x15a7   :  { %v640_v46 = vmul.f32 %v638_v44, %v1564_v61 }
0x15a8   :  { %v664_v10 = vadd.f32 %v660_v49, %v655_v2 }
0x15a9   :  { %v662_v3 = vadd.f32 %v640_v46, %v635_v6 }
0x15ab   :  { %v665_v12 = vadd.f32 %v662_v3, %v661_v5 }
0x15af   :  { %v648_v56 = vpop.permute.xlu1 %647 }
0x15b0   :  { %v650_v4 = vmul.f32 %v648_v56, %v1568_v63 }
0x15b2   :  { %v663_v11 = vadd.f32 %v650_v4, %v645_v57 }
0x15b4   :  { %v666_v13 = vadd.f32 %v664_v10, %v663_v11 }
0x15b6   :  { %v667_v14 = vadd.f32 %v666_v13, %v665_v12 }
0x15b8   :  { %v668_v15 = vadd.f32 %v667_v14, %v1582_v39 }
0x15ba   :  { %1313 = vtanh.f32 %v668_v15 }
0x15c0   :  { %v1314_v16 = vpop.eup %1313 }
0x15c1   :  { %674 = vrot.lane.b32.xlu1 %v1314_v16, %s1433_s28  ;;  %v670_v17 = vmul.f32 0.5, %v1314_v16 }
0x15c3   :  { %v671_v18 = vadd.f32 0.5, %v670_v17 }
0x15c5   :  { %v672_v22 = vmul.f32 %v671_v18, %v613_v35 }
0x1633   :  { %v675_v20 = vpop.permute.xlu1 %674 }
0x1634   :  { %v677_v21 = vmul.f32 %v675_v20, %v671_v18 }
0x1636   :  { %679 = vrot.lane.b32.xlu2 %v677_v21, %s1391_s18 }
0x1690   :  { %v680_v23 = vpop.permute.xlu2 %679 }
0x1691   :  { %v682_v24 = vadd.f32 %v680_v23, %v672_v22 }
0x1693   :  { %1315 = vtanh.f32 %v682_v24 }
0x1699   :  { %v1316_v25 = vpop.eup %1315 }
0x169a   :  { %685 = vrot.lane.b32.xlu1 %v1316_v25, %s1391_s18 }
0x170c   :  { %v686_v26 = vpop.permute.xlu1 %685 }
0x170d   :  { %v1655_v27 = vmul.f32 %v686_v26, %v671_v18 }
0x170f   :  { %701 = vperm.xlu1 %1231, %v1655_v27   ;;  %696 = vperm.xlu0 %1230, %v1655_v27  }
0x1710   :  { %691 = vperm.xlu2 %1229, %v1655_v27  }
0x1717   :  { %1233 = vset.pattern.permute.xlu1 %v1437_v51  ;;  %1235 = vset.pattern.permute.xlu0 %v1441_v54 }
0x1718   :  { %1232 = vset.pattern.permute.xlu2 %v1438_v52  ;;  %711 = vperm.xlu1 %1233, %v1655_v27  }
0x1719   :  { %721 = vperm.xlu0 %1235, %v1655_v27   ;;  %706 = vperm.xlu2 %1232, %v1655_v27  }
0x1720   :  { %1236 = vset.pattern.permute.xlu1 %v1440_v53 }
0x1721   :  { %1234 = vset.pattern.permute.xlu2 %v1439_v19  ;;  %726 = vperm.xlu1 %1236, %v1655_v27  }
0x1722   :  { %716 = vperm.xlu2 %1234, %v1655_v27   ;;  %1237 = vset.pattern.permute.xlu0 %v1434_v48 }
0x1729   :  { %1238 = vset.pattern.permute.xlu1 %v1436_v9 }
0x172a   :  { %1239 = vset.pattern.permute.xlu2 %v1435_v8 }
0x176a   :  { %v692_v28 = vpop.permute.xlu2 %691 }
0x176b   :  { %v694_v37 = vmul.f32 %v692_v28, %v1558_v58 }
0x1773   :  { %v707_v30 = vpop.permute.xlu2 %706 }
0x1774   :  { %v709_v40 = vmul.f32 %v707_v30, %v1564_v61 }
0x177c   :  { %v717_v33 = vpop.permute.xlu2 %716 }
0x177d   :  { %v719_v42 = vmul.f32 %v717_v33, %v1568_v63 }
0x1781   :  { %v702_v29 = vpop.permute.xlu1 %701  ;;  %v697_v31 = vpop.permute.xlu0 %696 }
0x1782   :  { %v704_v34 = vmul.f32 %v702_v29, %v1562_v60  ;;  %v699_v35 = vmul.f32 %v697_v31, %v1560_v59 }
0x1784   :  { %v731_v44 = vadd.f32 %v709_v40, %v704_v34  ;;  %v730_v45 = vadd.f32 %v699_v35, %v694_v37 }
0x1786   :  { %v734_v49 = vadd.f32 %v731_v44, %v730_v45 }
0x178a   :  { %v712_v32 = vpop.permute.xlu1 %711 }
0x178b   :  { %v722_v36 = vpop.permute.xlu0 %721  ;;  %v714_v41 = vmul.f32 %v712_v32, %v1566_v62 }
0x178c   :  { %v724_v46 = vmul.f32 %v722_v36, %v1570_v0 }
0x178d   :  { %v732_v6 = vadd.f32 %v719_v42, %v714_v41 }
0x1793   :  { %v727_v43 = vpop.permute.xlu1 %726 }
0x1794   :  { %v729_v7 = vmul.f32 %v727_v43, %v1572_v1 }
0x1796   :  { %v733_v47 = vadd.f32 %v729_v7, %v724_v46 }
0x1798   :  { %v735_v55 = vadd.f32 %v733_v47, %v732_v6 }
0x179a   :  { %v736_v56 = vadd.f32 %v735_v55, %v734_v49 }
0x179c   :  { %v737_v57 = vadd.f32 %v736_v56, %v1582_v39 }
0x179e   :  { %1317 = vtanh.f32 %v737_v57 }
0x17a4   :  { %v1318_v2 = vpop.eup %1317 }
0x17a5   :  { %743 = vrot.lane.b32.xlu2 %v1318_v2, %s1433_s28  ;;  %v739_v3 = vmul.f32 0.5, %v1318_v2 }
0x17a7   :  { %v740_v4 = vadd.f32 0.5, %v739_v3 }
0x17a9   :  { %v741_v11 = vmul.f32 %v740_v4, %v682_v24 }
0x17ff   :  { %v744_v5 = vpop.permute.xlu2 %743 }
0x1800   :  { %v746_v10 = vmul.f32 %v744_v5, %v740_v4 }
0x1802   :  { %748 = vrot.lane.b32.xlu1 %v746_v10, %s1391_s18 }
0x1874   :  { %v749_v12 = vpop.permute.xlu1 %748 }
0x1875   :  { %v751_v13 = vadd.f32 %v749_v12, %v741_v11 }
0x1877   :  { %1319 = vtanh.f32 %v751_v13 }
0x187d   :  { %v1320_v14 = vpop.eup %1319 }
0x187e   :  { %754 = vrot.lane.b32.xlu2 %v1320_v14, %s1391_s18 }
0x18d8   :  { %v755_v15 = vpop.permute.xlu2 %754 }
0x18d9   :  { %v1685_v16 = vmul.f32 %v755_v15, %v740_v4 }
0x18db   :  { %770 = vperm.xlu2 %1239, %v1685_v16   ;;  %765 = vperm.xlu1 %1238, %v1685_v16  }
0x18dc   :  { %760 = vperm.xlu0 %1237, %v1685_v16  }
0x18e3   :  { %1241 = vset.pattern.permute.xlu2 %v1437_v51  ;;  %1240 = vset.pattern.permute.xlu1 %v1438_v52 }
0x18e4   :  { %1242 = vset.pattern.permute.xlu0 %v1439_v19  ;;  %780 = vperm.xlu2 %1241, %v1685_v16  }
0x18e5   :  { %775 = vperm.xlu1 %1240, %v1685_v16   ;;  %785 = vperm.xlu0 %1242, %v1685_v16  }
0x18ec   :  { %1244 = vset.pattern.permute.xlu2 %v1440_v53 }
0x18ed   :  { %1243 = vset.pattern.permute.xlu1 %v1441_v54  ;;  %795 = vperm.xlu2 %1244, %v1685_v16  }
0x18ee   :  { %790 = vperm.xlu1 %1243, %v1685_v16   ;;  %1247 = vset.pattern.permute.xlu0 %v1435_v8 }
0x18f5   :  { %1246 = vset.pattern.permute.xlu2 %v1436_v9 }
0x18f6   :  { %1245 = vset.pattern.permute.xlu1 %v1434_v48 }
0x1935   :  { %v771_v17 = vpop.permute.xlu2 %770 }
0x1936   :  { %v773_v26 = vmul.f32 %v771_v17, %v1562_v60 }
0x193e   :  { %v781_v21 = vpop.permute.xlu2 %780 }
0x193f   :  { %v783_v32 = vmul.f32 %v781_v21, %v1566_v62 }
0x1947   :  { %v796_v25 = vpop.permute.xlu2 %795 }
0x1948   :  { %v798_v33 = vmul.f32 %v796_v25, %v1572_v1 }
0x194d   :  { %v766_v18 = vpop.permute.xlu1 %765 }
0x194e   :  { %v761_v20 = vpop.permute.xlu0 %760  ;;  %v768_v28 = vmul.f32 %v766_v18, %v1560_v59 }
0x194f   :  { %v763_v29 = vmul.f32 %v761_v20, %v1558_v58 }
0x1951   :  { %v799_v36 = vadd.f32 %v768_v28, %v763_v29 }
0x1957   :  { %v776_v22 = vpop.permute.xlu1 %775  ;;  %v786_v23 = vpop.permute.xlu0 %785 }
0x1958   :  { %v778_v24 = vmul.f32 %v776_v22, %v1564_v61  ;;  %v788_v30 = vmul.f32 %v786_v23, %v1568_v63 }
0x195a   :  { %v800_v34 = vadd.f32 %v778_v24, %v773_v26  ;;  %v801_v37 = vadd.f32 %v788_v30, %v783_v32 }
0x195c   :  { %v803_v41 = vadd.f32 %v800_v34, %v799_v36 }
0x1960   :  { %v791_v31 = vpop.permute.xlu1 %790 }
0x1961   :  { %v793_v35 = vmul.f32 %v791_v31, %v1570_v0 }
0x1963   :  { %v802_v40 = vadd.f32 %v798_v33, %v793_v35 }
0x1965   :  { %v804_v42 = vadd.f32 %v802_v40, %v801_v37 }
0x1967   :  { %v805_v43 = vadd.f32 %v804_v42, %v803_v41 }
0x1969   :  { %v806_v44 = vadd.f32 %v805_v43, %v1582_v39 }
0x196b   :  { %1321 = vtanh.f32 %v806_v44 }
0x1971   :  { %v1322_v45 = vpop.eup %1321 }
0x1972   :  { %812 = vrot.lane.b32.xlu1 %v1322_v45, %s1433_s28  ;;  %v808_v46 = vmul.f32 0.5, %v1322_v45 }
0x1974   :  { %v809_v7 = vadd.f32 0.5, %v808_v46 }
0x1976   :  { %v810_v49 = vmul.f32 %v809_v7, %v751_v13 }
0x19e4   :  { %v813_v6 = vpop.permute.xlu1 %812 }
0x19e5   :  { %v815_v47 = vmul.f32 %v813_v6, %v809_v7 }
0x19e7   :  { %817 = vrot.lane.b32.xlu2 %v815_v47, %s1391_s18 }
0x1a41   :  { %v818_v55 = vpop.permute.xlu2 %817 }
0x1a42   :  { %v820_v56 = vadd.f32 %v818_v55, %v810_v49 }
0x1a44   :  { %1323 = vtanh.f32 %v820_v56 }
0x1a4a   :  { %v1324_v57 = vpop.eup %1323 }
0x1a4b   :  { %823 = vrot.lane.b32.xlu0 %v1324_v57, %s1391_s18 }
0x1abd   :  { %v824_v2 = vpop.permute.xlu0 %823 }
0x1abe   :  { %v1715_v3 = vmul.f32 %v824_v2, %v809_v7 }
0x1ac0   :  { %839 = vperm.xlu0 %1247, %v1715_v3   ;;  %834 = vperm.xlu2 %1246, %v1715_v3  }
0x1ac1   :  { %829 = vperm.xlu1 %1245, %v1715_v3  }
0x1ac8   :  { %1252 = vset.pattern.permute.xlu0 %v1440_v53  ;;  %1249 = vset.pattern.permute.xlu2 %v1437_v51 }
0x1ac9   :  { %1248 = vset.pattern.permute.xlu1 %v1438_v52  ;;  %864 = vperm.xlu0 %1252, %v1715_v3  }
0x1aca   :  { %849 = vperm.xlu2 %1249, %v1715_v3   ;;  %844 = vperm.xlu1 %1248, %v1715_v3  }
0x1ad1   :  { %1254 = vset.pattern.permute.xlu0 %v1436_v9 }
0x1ad2   :  { %1251 = vset.pattern.permute.xlu2 %v1441_v54  ;;  %1250 = vset.pattern.permute.xlu1 %v1439_v19 }
0x1ad3   :  { %859 = vperm.xlu2 %1251, %v1715_v3   ;;  %854 = vperm.xlu1 %1250, %v1715_v3  }
0x1adb   :  { %1253 = vset.pattern.permute.xlu2 %v1434_v48  ;;  %1255 = vset.pattern.permute.xlu1 %v1435_v8 }
0x1b1a   :  { %v835_v4 = vpop.permute.xlu2 %834 }
0x1b1b   :  { %v837_v21 = vmul.f32 %v835_v4, %v1560_v59 }
0x1b24   :  { %v850_v11 = vpop.permute.xlu2 %849 }
0x1b25   :  { %v852_v23 = vmul.f32 %v850_v11, %v1566_v62 }
0x1b2d   :  { %v860_v15 = vpop.permute.xlu2 %859 }
0x1b2e   :  { %v862_v24 = vmul.f32 %v860_v15, %v1570_v0 }
0x1b32   :  { %v840_v10 = vpop.permute.xlu0 %839 }
0x1b33   :  { %v830_v5 = vpop.permute.xlu1 %829  ;;  %v842_v17 = vmul.f32 %v840_v10, %v1562_v60 }
0x1b34   :  { %v832_v18 = vmul.f32 %v830_v5, %v1558_v58 }
0x1b36   :  { %v868_v28 = vadd.f32 %v837_v21, %v832_v18 }
0x1b3b   :  { %v865_v13 = vpop.permute.xlu0 %864 }
0x1b3c   :  { %v845_v12 = vpop.permute.xlu1 %844  ;;  %v867_v20 = vmul.f32 %v865_v13, %v1572_v1 }
0x1b3d   :  { %v847_v14 = vmul.f32 %v845_v12, %v1564_v61 }
0x1b3e   :  { %v871_v29 = vadd.f32 %v867_v20, %v862_v24 }
0x1b3f   :  { %v869_v25 = vadd.f32 %v847_v14, %v842_v17 }
0x1b41   :  { %v872_v31 = vadd.f32 %v869_v25, %v868_v28 }
0x1b45   :  { %v855_v22 = vpop.permute.xlu1 %854 }
0x1b46   :  { %v857_v26 = vmul.f32 %v855_v22, %v1568_v63 }
0x1b48   :  { %v870_v30 = vadd.f32 %v857_v26, %v852_v23 }
0x1b4a   :  { %v873_v32 = vadd.f32 %v871_v29, %v870_v30 }
0x1b4c   :  { %v874_v33 = vadd.f32 %v873_v32, %v872_v31 }
0x1b4e   :  { %v875_v34 = vadd.f32 %v874_v33, %v1582_v39 }
0x1b50   :  { %1325 = vtanh.f32 %v875_v34 }
0x1b56   :  { %v1326_v35 = vpop.eup %1325 }
0x1b57   :  { %881 = vrot.lane.b32.xlu1 %v1326_v35, %s1433_s28  ;;  %v877_v36 = vmul.f32 0.5, %v1326_v35 }
0x1b59   :  { %v878_v37 = vadd.f32 0.5, %v877_v36 }
0x1b5b   :  { %v879_v42 = vmul.f32 %v878_v37, %v820_v56 }
0x1bc9   :  { %v882_v40 = vpop.permute.xlu1 %881 }
0x1bca   :  { %v884_v41 = vmul.f32 %v882_v40, %v878_v37 }
0x1bcc   :  { %886 = vrot.lane.b32.xlu2 %v884_v41, %s1391_s18 }
0x1c26   :  { %v887_v43 = vpop.permute.xlu2 %886 }
0x1c27   :  { %v889_v44 = vadd.f32 %v887_v43, %v879_v42 }
0x1c29   :  { %1327 = vtanh.f32 %v889_v44 }
0x1c2f   :  { %v1328_v45 = vpop.eup %1327 }
0x1c30   :  { %892 = vrot.lane.b32.xlu1 %v1328_v45, %s1391_s18 }
0x1ca2   :  { %v893_v46 = vpop.permute.xlu1 %892 }
0x1ca3   :  { %v1745_v7 = vmul.f32 %v893_v46, %v878_v37 }
0x1ca5   :  { %908 = vperm.xlu1 %1255, %v1745_v7   ;;  %903 = vperm.xlu0 %1254, %v1745_v7  }
0x1ca6   :  { %898 = vperm.xlu2 %1253, %v1745_v7  }
0x1cad   :  { %1257 = vset.pattern.permute.xlu1 %v1437_v51  ;;  %1259 = vset.pattern.permute.xlu0 %v1441_v54 }
0x1cae   :  { %1256 = vset.pattern.permute.xlu2 %v1438_v52  ;;  %918 = vperm.xlu1 %1257, %v1745_v7  }
0x1caf   :  { %928 = vperm.xlu0 %1259, %v1745_v7   ;;  %913 = vperm.xlu2 %1256, %v1745_v7  }
0x1cb6   :  { %1260 = vset.pattern.permute.xlu1 %v1440_v53 }
0x1cb7   :  { %1258 = vset.pattern.permute.xlu2 %v1439_v19  ;;  %933 = vperm.xlu1 %1260, %v1745_v7  }
0x1cb8   :  { %923 = vperm.xlu2 %1258, %v1745_v7   ;;  %1261 = vset.pattern.permute.xlu0 %v1434_v48 }
0x1cbf   :  { %1262 = vset.pattern.permute.xlu1 %v1436_v9 }
0x1cc0   :  { %1263 = vset.pattern.permute.xlu2 %v1435_v8 }
0x1d00   :  { %v899_v6 = vpop.permute.xlu2 %898 }
0x1d01   :  { %v901_v10 = vmul.f32 %v899_v6, %v1558_v58 }
0x1d09   :  { %v914_v49 = vpop.permute.xlu2 %913 }
0x1d0a   :  { %v916_v11 = vmul.f32 %v914_v49, %v1564_v61 }
0x1d12   :  { %v924_v57 = vpop.permute.xlu2 %923 }
0x1d13   :  { %v926_v9 = vmul.f32 %v924_v57, %v1568_v63 }
0x1d17   :  { %v909_v47 = vpop.permute.xlu1 %908  ;;  %v904_v55 = vpop.permute.xlu0 %903 }
0x1d18   :  { %v911_v2 = vmul.f32 %v909_v47, %v1562_v60  ;;  %v906_v4 = vmul.f32 %v904_v55, %v1560_v59 }
0x1d1a   :  { %v938_v12 = vadd.f32 %v916_v11, %v911_v2  ;;  %v937_v13 = vadd.f32 %v906_v4, %v901_v10  ;;  %v44_v11 = vld [vmem:[#allocation2 + $0x70] sm:$0xff] }
0x1d1c   :  { %v941_v20 = vadd.f32 %v938_v12, %v937_v13 }
0x1d20   :  { %v919_v56 = vpop.permute.xlu1 %918 }
0x1d21   :  { %v929_v5 = vpop.permute.xlu0 %928  ;;  %v921_v48 = vmul.f32 %v919_v56, %v1566_v62 }
0x1d22   :  { %v931_v14 = vmul.f32 %v929_v5, %v1570_v0 }
0x1d23   :  { %v939_v17 = vadd.f32 %v926_v9, %v921_v48  ;;  %v43_v48 = vld [vmem:[#allocation2 + $0x68] sm:$0xff]  ;;  %v42_v9 = vld [vmem:[#allocation2 + $0x60] sm:$0xff] }
0x1d29   :  { %v934_v8 = vpop.permute.xlu1 %933 }
0x1d2a   :  { %v936_v15 = vmul.f32 %v934_v8, %v1572_v1  ;;  %v41_v8 = vld [vmem:[#allocation2 + $0x58] sm:$0xff] }
0x1d2c   :  { %v940_v18 = vadd.f32 %v936_v15, %v931_v14  ;;  %v39_v14 = vld [vmem:[#allocation2 + $0x48] sm:$0xff] }
0x1d2e   :  { %v942_v21 = vadd.f32 %v940_v18, %v939_v17 }
0x1d30   :  { %v943_v22 = vadd.f32 %v942_v21, %v941_v20 }
0x1d32   :  { %v944_v23 = vadd.f32 %v943_v22, %v1582_v39 }
0x1d34   :  { %1329 = vtanh.f32 %v944_v23 }
0x1d3a   :  { %v1330_v24 = vpop.eup %1329 }
0x1d3b   :  { %950 = vrot.lane.b32.xlu2 %v1330_v24, %s1433_s28  ;;  %v946_v25 = vmul.f32 0.5, %v1330_v24 }
0x1d3d   :  { %v947_v26 = vadd.f32 0.5, %v946_v25 }
0x1d3f   :  { %v948_v30 = vmul.f32 %v947_v26, %v889_v44 }
0x1d95   :  { %v951_v28 = vpop.permute.xlu2 %950 }
0x1d96   :  { %v953_v29 = vmul.f32 %v951_v28, %v947_v26 }
0x1d98   :  { %955 = vrot.lane.b32.xlu1 %v953_v29, %s1391_s18 }
0x1e0a   :  { %v956_v31 = vpop.permute.xlu1 %955 }
0x1e0b   :  { %v958_v32 = vadd.f32 %v956_v31, %v948_v30 }
0x1e0d   :  { %1331 = vtanh.f32 %v958_v32 }
0x1e13   :  { %v1332_v33 = vpop.eup %1331 }
0x1e14   :  { %961 = vrot.lane.b32.xlu2 %v1332_v33, %s1391_s18 }
0x1e6e   :  { %v962_v34 = vpop.permute.xlu2 %961 }
0x1e6f   :  { %v964_v35 = vmul.f32 %v962_v34, %v947_v26 }
0x1e71   :  { %977 = vperm.xlu2 %1263, %v964_v35   ;;  %972 = vperm.xlu1 %1262, %v964_v35  }
0x1e72   :  { %967 = vperm.xlu0 %1261, %v964_v35  }
0x1e79   :  { %1265 = vset.pattern.permute.xlu2 %v1437_v51  ;;  %1264 = vset.pattern.permute.xlu1 %v1438_v52 }
0x1e7a   :  { %1266 = vset.pattern.permute.xlu0 %v1439_v19  ;;  %987 = vperm.xlu2 %1265, %v964_v35  }
0x1e7b   :  { %982 = vperm.xlu1 %1264, %v964_v35   ;;  %992 = vperm.xlu0 %1266, %v964_v35  }
0x1e82   :  { %1268 = vset.pattern.permute.xlu2 %v1440_v53 }
0x1e83   :  { %1267 = vset.pattern.permute.xlu1 %v1441_v54  ;;  %1002 = vperm.xlu2 %1268, %v964_v35  }
0x1e84   :  { %997 = vperm.xlu1 %1267, %v964_v35   ;;  %1269 = vset.pattern.permute.xlu0 %v1440_v53 }
0x1ecb   :  { %v978_v36 = vpop.permute.xlu2 %977 }
0x1ecc   :  { %v980_v43 = vmul.f32 %v978_v36, %v1562_v60 }
0x1ed4   :  { %v988_v41 = vpop.permute.xlu2 %987 }
0x1ed5   :  { %v990_v53 = vmul.f32 %v988_v41, %v1566_v62 }
0x1edd   :  { %v1003_v19 = vpop.permute.xlu2 %1002 }
0x1ede   :  { %v1005_v6 = vmul.f32 %v1003_v19, %v1572_v1 }
0x1ee3   :  { %v973_v37 = vpop.permute.xlu1 %972 }
0x1ee4   :  { %v968_v40 = vpop.permute.xlu0 %967  ;;  %v975_v44 = vmul.f32 %v973_v37, %v1560_v59 }
0x1ee5   :  { %v970_v45 = vmul.f32 %v968_v40, %v1558_v58 }
0x1ee7   :  { %v1006_v55 = vadd.f32 %v975_v44, %v970_v45 }
0x1eed   :  { %v983_v51 = vpop.permute.xlu1 %982  ;;  %v993_v42 = vpop.permute.xlu0 %992 }
0x1eee   :  { %v985_v52 = vmul.f32 %v983_v51, %v1564_v61  ;;  %v995_v54 = vmul.f32 %v993_v42, %v1568_v63 }
0x1ef0   :  { %v1007_v47 = vadd.f32 %v985_v52, %v980_v43  ;;  %v1008_v56 = vadd.f32 %v995_v54, %v990_v53 }
0x1ef2   :  { %v1010_v57 = vadd.f32 %v1007_v47, %v1006_v55 }
0x1ef6   :  { %v998_v46 = vpop.permute.xlu1 %997 }
0x1ef7   :  { %v1000_v49 = vmul.f32 %v998_v46, %v1570_v0 }
0x1ef9   :  { %v1009_v61 = vadd.f32 %v1005_v6, %v1000_v49 }
0x1efb   :  { %v1011_v2 = vadd.f32 %v1009_v61, %v1008_v56 }
0x1efd   :  { %v1012_v60 = vadd.f32 %v1011_v2, %v1010_v57 }
0x1eff   :  { %v1013_v59 = vadd.f32 %v1012_v60, %v1582_v39 }
0x1f01   :  { %1333 = vtanh.f32 %v1013_v59 }
0x1f07   :  { %v1334_v58 = vpop.eup %1333 }
0x1f08   :  { %1019 = vrot.lane.b32.xlu1 %v1334_v58, %s1433_s28  ;;  %v1015_v62 = vmul.f32 0.5, %v1334_v58 }
0x1f0a   :  { %v1016_v63 = vadd.f32 0.5, %v1015_v62 }
0x1f0c   :  { %v1017_v39 = vmul.f32 %v1016_v63, %v958_v32 }
0x1f10   :  { %1034 = vrot.lane.b32.xlu1 %v1594_v50, %s1428_s27 }
0x1f18   :  { %1043 = vrot.lane.b32.xlu1 %v1715_v3, %s1398_s21 }
0x1f7a   :  { %v1020_v0 = vpop.permute.xlu1 %1019 }
0x1f7b   :  { %v1022_v1 = vmul.f32 %v1020_v0, %v1016_v63 }
0x1f7d   :  { %1024 = vrot.lane.b32.xlu2 %v1022_v1, %s1391_s18 }
0x1f82   :  { %v1035_v17 = vpop.permute.xlu1 %1034 }
0x1f85   :  { %1037 = vrot.lane.b32.xlu2 %v1625_v38, %s1442_s29  ;;  %v46_v38 = vld [vmem:[#allocation2 + $0x80] sm:$0xff] }
0x1f86   :  { %1082 = vmatpush.msra.mxu1 %v46_v38 }
0x1f8a   :  { %v1044_v21 = vpop.permute.xlu1 %1043 }
0x1f8d   :  { %1046 = vrot.lane.b32.xlu2 %v1745_v7, %s1443_s30  ;;  %v45_v7 = vld [vmem:[#allocation2 + $0x78] sm:$0xff] }
0x1f8e   :  { %1083 = vmatpush.msra.mxu1 %v45_v7 }
0x1f90   :  { %1084 = vmatpush.msra.mxu1 %v44_v11 }
0x1f92   :  { %1085 = vmatpush.msra.mxu1 %v43_v48 }
0x1f94   :  { %1086 = vmatpush.msra.mxu1 %v42_v9 }
0x1f96   :  { %1087 = vmatpush.msra.mxu1 %v41_v8 }
0x1fd7   :  { %v1025_v4 = vpop.permute.xlu2 %1024 }
0x1fd8   :  { %v1027_v5 = vadd.f32 %v1025_v4, %v1017_v39 }
0x1fda   :  { %1335 = vtanh.f32 %v1027_v5 }
0x1fdf   :  { %v1038_v12 = vpop.permute.xlu2 %1037 }
0x1fe0   :  { %v1336_v50 = vpop.eup %1335  ;;  %v1057_v20 = vsel %vm1056_vm2, %v1035_v17, %v1038_v12 }
0x1fe1   :  { %1030 = vrot.lane.b32.xlu0 %v1336_v50, %s1391_s18  ;;  %v1059_v22 = vsel %vm1058_vm3, %v1057_v20, %v1655_v27  ;;  %v1272_v27 = vld [vmem:[#allocation2 + $0x88] ss:$0 sm:$0xff] }
0x1fe7   :  { %v1047_v13 = vpop.permute.xlu2 %1046 }
0x1fe9   :  { %1040 = vrot.lane.b32.xlu0 %v1685_v16, %s1391_s18  ;;  %v40_v16 = vld [vmem:[#allocation2 + $0x50] sm:$0xff] }
0x1fea   :  { %1088 = vmatpush.msra.mxu1 %v40_v16 }
0x1fec   :  { %1089 = vmatpush.msra.mxu1 %v39_v14 }
0x1ff1   :  { %1049 = vrot.lane.b32.xlu0 %v964_v35, %s1403_s22 }
0x2053   :  { %v1031_v3 = vpop.permute.xlu0 %1030 }
0x2054   :  { %v1033_v10 = vmul.f32 %v1031_v3, %v1016_v63 }
0x2056   :  { %1096 = vrot.lane.b32.xlu2 %v1033_v10, %s1428_s27  ;;  %1053 = vrot.lane.b32.xlu1 %v1033_v10, %s1444_s4 }
0x205b   :  { %v1041_v18 = vpop.permute.xlu0 %1040 }
0x205c   :  { %v1061_v23 = vsel %vm1060_vm4, %v1059_v22, %v1041_v18 }
0x205d   :  { %v1062_v24 = vsel %vm50_vm0, %v1061_v23, %v1044_v21 }
0x205e   :  { %v1064_v26 = vsel %vm1063_vm5, %v1062_v24, %v1047_v13 }
0x2063   :  { %v1050_v25 = vpop.permute.xlu0 %1049 }
0x2064   :  { %v1066_v28 = vsel %vm1065_vm6, %v1064_v26, %v1050_v25 }
0x20b0   :  { %v1097_v15 = vpop.permute.xlu2 %1096 }
0x20b1   :  { %1100 = vst.msk [vmem:[#allocation5] sm:$0x3] %vm1099_vm1, %v1097_v15 }
0x20b2   :  { %1113 = dma.vmem_to_hbm [thread:$0]  %s1109_s6, 32, %s1111_s9, [#allocation4]  }
0x20c8   :  { %v1054_v29 = vpop.permute.xlu1 %1053 }
0x20c9   :  { %v1068_v30 = vsel %vm1067_vm7, %v1066_v28, %v1054_v29 }
0x20ca   :  { %1123 = vmatmul.msk.f32.vlgmr.msra.gmra.mxu1 %vm1070_vm8, %v1068_v30 }
0x2147   :  { %v1091_v31 = vpop.f32.mrf.mxu1 }
0x2148   :  { %v1092_v32 = vadd.f32 %v1272_v27, %v1091_v31 }
0x214a   :  { %1095 = vst.msk [vmem:[%s1813_s2] sm:$0x3] %vm1094_vm9, %v1092_v32 }
0x214b   :  { %1387 = dma.done.wait [#allocation4], 32  }
0x214c   :  { %1388 = vsyncadd [#allocation4], 4294967264 }
0x214d   :  { %1120 = vsyncpa [#allocation3], 1 }
0x214e   :  { %1121 = vsyncpa [#allocation4], 1 }

</bundles_post_ra>
